<compile_context>
chip_gen: v7x
topology: tpu7x:2x2x1
jax: 0.10.0
libtpu: 0.0.40
codegen_flags: <defaults>
</compile_context>

<pallas_src>
import jax
import jax.numpy as jnp
from jax import lax
from jax.experimental import pallas as pl
from jax.experimental.pallas import tpu as pltpu

# ----------------------------- small synthetic BERT config -------------------
VOCAB      = 100
MAX_POS    = 16
HIDDEN     = 32
N_HEADS    = 4
HEAD_DIM   = HIDDEN // N_HEADS
INTER      = 64
N_LAYERS   = 2
NUM_LABELS = 2
LN_EPS     = 1e-12


# ----------------------------- kernel helpers --------------------------------
def _layernorm(x, gamma, beta):
    # x: (T, H), gamma/beta: (1, H)
    mu = jnp.mean(x, axis=-1, keepdims=True)
    var = jnp.mean((x - mu) ** 2, axis=-1, keepdims=True)
    return (x - mu) * lax.rsqrt(var + LN_EPS) * gamma + beta


# ----------------------------- fused Pallas kernel ---------------------------
def fused_bert_kernel(emb_ref, bias_ref, labels_ref,
                      eln_g_ref, eln_b_ref,
                      wqkv_ref, bqkv_ref, wo_ref, bo_ref,
                      ln1g_ref, ln1b_ref,
                      w1_ref, b1_ref, w2_ref, b2_ref,
                      ln2g_ref, ln2b_ref,
                      cls_w_ref, cls_b_ref,
                      logits_ref, loss_ref, ctx_ref):
    """Full forward pass: embeddings-LN -> N_LAYERS encoder -> classifier -> CE.

    All activations are 2-D (B*S, feature).  Per-batch attention is enforced
    by the precomputed block-diagonal additive bias (B*S, B*S), which also
    carries the padding mask for key positions.
    """
    BS, H = emb_ref.shape
    scale = 1.0 / (HEAD_DIM ** 0.5)

    # Embedding layernorm over all tokens at once.
    x = _layernorm(emb_ref[...], eln_g_ref[...], eln_b_ref[...])
    bias = bias_ref[...]                                  # (BS, BS)

    for l in range(N_LAYERS):                             # static unroll (N_LAYERS=2)
        # Fused QKV projection: one (BS,H)x(H,3H) matmul instead of three.
        qkv = jnp.dot(x, wqkv_ref[l],
                      preferred_element_type=jnp.float32) + bqkv_ref[l]
        q = qkv[:, 0:H] * scale                           # scale q once (not per head)
        k = qkv[:, H:2 * H]
        v = qkv[:, 2 * H:3 * H]

        for h in range(N_HEADS):                          # static head loop
            sl = slice(h * HEAD_DIM, (h + 1) * HEAD_DIM)
            # scores over the whole flattened batch; cross-batch pairs and
            # masked keys are killed by the additive bias.
            s = lax.dot_general(q[:, sl], k[:, sl], (((1,), (1,)), ((), ())),
                                preferred_element_type=jnp.float32)
            s = s + bias
            s = s - jnp.max(s, axis=-1, keepdims=True)
            p = jnp.exp(s)
            p = p * pl.reciprocal(jnp.sum(p, axis=-1, keepdims=True), approx=True)
            # write each head's context into its lane slice of the scratch
            ctx_ref[:, sl] = jnp.dot(p, v[:, sl],
                                     preferred_element_type=jnp.float32)

        attn = jnp.dot(ctx_ref[...], wo_ref[l],
                       preferred_element_type=jnp.float32) + bo_ref[l]
        x = _layernorm(x + attn, ln1g_ref[l], ln1b_ref[l])

        hmid = jnp.dot(x, w1_ref[l],
                       preferred_element_type=jnp.float32) + b1_ref[l]
        # TODO(synk): HF BERT uses exact erf-GELU; tanh approximation used here
        # for robust Mosaic lowering (max abs deviation ~1e-3).
        hmid = jax.nn.gelu(hmid, approximate=True)
        ffn = jnp.dot(hmid, w2_ref[l],
                      preferred_element_type=jnp.float32) + b2_ref[l]
        x = _layernorm(x + ffn, ln2g_ref[l], ln2b_ref[l])

    # Token-classification head (dropout = identity in eval).
    logits = jnp.dot(x, cls_w_ref[...],
                     preferred_element_type=jnp.float32) + cls_b_ref[...]
    logits_ref[...] = logits                              # (BS, NUM_LABELS)

    # Cross-entropy over all B*S tokens (CrossEntropyLoss on view(-1, 2)).
    labels = labels_ref[...]                              # (BS, 1) int32
    m = jnp.max(logits, axis=-1, keepdims=True)
    lse = m + jnp.log(jnp.sum(jnp.exp(logits - m), axis=-1, keepdims=True))
    onehot = (labels == lax.broadcasted_iota(jnp.int32, logits.shape, 1)
              ).astype(jnp.float32)
    picked = jnp.sum(logits * onehot, axis=-1, keepdims=True)
    loss_ref[...] = jnp.mean(lse - picked, axis=(0, 1), keepdims=True)


# ----------------------------- glue helpers ----------------------------------
def _full_block(a):
    nd = a.ndim
    return pl.BlockSpec(a.shape, lambda i, nd=nd: (0,) * nd)


def _build_attn_bias(attention_mask):
    """(B*S, B*S) additive bias: -10000 for cross-batch pairs or masked keys."""
    B, S = attention_mask.shape
    key_ok = attention_mask.astype(jnp.float32).reshape(B * S)      # (BS,)
    batch_id = jnp.repeat(jnp.arange(B), S)                          # (BS,)
    same_batch = (batch_id[:, None] == batch_id[None, :]).astype(jnp.float32)
    allowed = same_batch * key_ok[None, :]
    return (1.0 - allowed) * -10000.0


def _stack_layer_params(layers):
    one = lambda k: jnp.stack([L[k] for L in layers], axis=0)
    cat = lambda keys: jnp.stack(
        [jnp.concatenate([L[k] for k in keys], axis=1) for L in layers], axis=0)
    return {
        'wqkv': cat(('wq', 'wk', 'wv')),      # (N_LAYERS, H, 3H)
        'bqkv': cat(('bq', 'bk', 'bv')),      # (N_LAYERS, 1, 3H)
        'wo': one('wo'), 'bo': one('bo'),
        'ln1_g': one('ln1_g'), 'ln1_b': one('ln1_b'),
        'w1': one('w1'), 'b1': one('b1'),
        'w2': one('w2'), 'b2': one('b2'),
        'ln2_g': one('ln2_g'), 'ln2_b': one('ln2_b'),
    }


# ----------------------------- model forward (single fused launch) -----------
def skill_extraction_bert_forward(input_ids, attention_mask, params, labels=None):
    B, S = input_ids.shape
    BS = B * S
    # embeddings (gathers are glue)
    emb = (params['word_emb'][input_ids]
           + params['pos_emb'][jnp.arange(S)][None, :, :]
           + params['type_emb'][0][None, None, :]).astype(jnp.float32)
    emb2d = emb.reshape(BS, HIDDEN)
    attn_bias = _build_attn_bias(attention_mask)                      # (BS, BS)
    if labels is None:
        labels2d = jnp.zeros((BS, 1), jnp.int32)
    else:
        labels2d = labels.astype(jnp.int32).reshape(BS, 1)

    stk = _stack_layer_params(params['layers'])
    args = (emb2d, attn_bias, labels2d,
            params['emb_ln_g'], params['emb_ln_b'],
            stk['wqkv'], stk['bqkv'], stk['wo'], stk['bo'],
            stk['ln1_g'], stk['ln1_b'],
            stk['w1'], stk['b1'], stk['w2'], stk['b2'],
            stk['ln2_g'], stk['ln2_b'],
            params['cls_w'], params['cls_b'])

    logits2d, loss = pl.pallas_call(
        fused_bert_kernel,
        out_shape=(jax.ShapeDtypeStruct((BS, NUM_LABELS), jnp.float32),
                   jax.ShapeDtypeStruct((1, 1), jnp.float32)),
        grid_spec=pltpu.PrefetchScalarGridSpec(
            num_scalar_prefetch=0,
            grid=(1,),
            in_specs=[_full_block(a) for a in args],
            out_specs=[pl.BlockSpec((BS, NUM_LABELS), lambda i: (0, 0)),
                       pl.BlockSpec((1, 1), lambda i: (0, 0))],
            scratch_shapes=[pltpu.VMEM((BS, HIDDEN), jnp.float32)]),
        compiler_params=pltpu.CompilerParams(
            dimension_semantics=("arbitrary",)),
    )(*args)

    logits = logits2d.reshape(B, S, NUM_LABELS)
    return {'loss': (loss[0, 0] if labels is not None else None), 'logits': logits}


# ----------------------------- deterministic param init ----------------------
def init_params(key):
    n_mats = 3 + N_LAYERS * 6 + 1
    keys = iter(jax.random.split(key, n_mats))
    nrm = lambda shape: 0.02 * jax.random.normal(next(keys), shape, jnp.float32)
    zeros = lambda shape: jnp.zeros(shape, jnp.float32)
    ones = lambda shape: jnp.ones(shape, jnp.float32)

    params = {
        'word_emb': nrm((VOCAB, HIDDEN)),
        'pos_emb':  nrm((MAX_POS, HIDDEN)),
        'type_emb': nrm((2, HIDDEN)),
        'emb_ln_g': ones((1, HIDDEN)), 'emb_ln_b': zeros((1, HIDDEN)),
        'layers': [],
    }
    for _ in range(N_LAYERS):
        params['layers'].append({
            'wq': nrm((HIDDEN, HIDDEN)), 'bq': zeros((1, HIDDEN)),
            'wk': nrm((HIDDEN, HIDDEN)), 'bk': zeros((1, HIDDEN)),
            'wv': nrm((HIDDEN, HIDDEN)), 'bv': zeros((1, HIDDEN)),
            'wo': nrm((HIDDEN, HIDDEN)), 'bo': zeros((1, HIDDEN)),
            'ln1_g': ones((1, HIDDEN)), 'ln1_b': zeros((1, HIDDEN)),
            'w1': nrm((HIDDEN, INTER)), 'b1': zeros((1, INTER)),
            'w2': nrm((INTER, HIDDEN)), 'b2': zeros((1, HIDDEN)),
            'ln2_g': ones((1, HIDDEN)), 'ln2_b': zeros((1, HIDDEN)),
        })
    params['cls_w'] = nrm((HIDDEN, NUM_LABELS))
    params['cls_b'] = zeros((1, NUM_LABELS))
    return params


# ----------------------------- pure-JAX reference (for sanity) ---------------
def reference_forward(input_ids, attention_mask, params, labels):
    def ln(x, g, b):
        mu = jnp.mean(x, axis=-1, keepdims=True)
        var = jnp.mean((x - mu) ** 2, axis=-1, keepdims=True)
        return (x - mu) * lax.rsqrt(var + LN_EPS) * g + b

    B, S = input_ids.shape
    x = (params['word_emb'][input_ids]
         + params['pos_emb'][jnp.arange(S)][None, :, :]
         + params['type_emb'][0][None, None, :])
    x = ln(x, params['emb_ln_g'], params['emb_ln_b'])
    mask_bias = (1.0 - attention_mask.astype(jnp.float32)) * -10000.0  # (B, S)
    for L in params['layers']:
        q = (x @ L['wq'] + L['bq']).reshape(B, S, N_HEADS, HEAD_DIM).transpose(0, 2, 1, 3)
        k = (x @ L['wk'] + L['bk']).reshape(B, S, N_HEADS, HEAD_DIM).transpose(0, 2, 1, 3)
        v = (x @ L['wv'] + L['bv']).reshape(B, S, N_HEADS, HEAD_DIM).transpose(0, 2, 1, 3)
        s = jnp.einsum('bhqd,bhkd->bhqk', q, k) / (HEAD_DIM ** 0.5)
        s = s + mask_bias[:, None, None, :]
        p = jax.nn.softmax(s, axis=-1)
        ctx = jnp.einsum('bhqk,bhkd->bhqd', p, v).transpose(0, 2, 1, 3).reshape(B, S, HIDDEN)
        x = ln(x + ctx @ L['wo'] + L['bo'], L['ln1_g'], L['ln1_b'])
        h = jax.nn.gelu(x @ L['w1'] + L['b1'], approximate=True)
        x = ln(x + h @ L['w2'] + L['b2'], L['ln2_g'], L['ln2_b'])
    logits = x @ params['cls_w'] + params['cls_b']
    logp = jax.nn.log_softmax(logits, axis=-1)
    nll = -jnp.take_along_axis(logp, labels[..., None], axis=-1)[..., 0]
    return logits, jnp.mean(nll)


# ----------------------------- main -------------------------------------------
if __name__ == "__main__":
    key = jax.random.PRNGKey(0)
    pkey, ikey, lkey = jax.random.split(key, 3)
    params = init_params(pkey)

    B, S = 2, 8
    input_ids = jax.random.randint(ikey, (B, S), 0, VOCAB, dtype=jnp.int32)
    attention_mask = jnp.ones((B, S), jnp.int32).at[1, 6:].set(0)
    labels = jax.random.randint(lkey, (B, S), 0, NUM_LABELS, dtype=jnp.int32)

    out = skill_extraction_bert_forward(input_ids, attention_mask, params, labels=labels)
    jax.block_until_ready(out['logits'])
    jax.block_until_ready(out['loss'])

    ref_logits, ref_loss = reference_forward(input_ids, attention_mask, params, labels)
    assert out['logits'].shape == (B, S, NUM_LABELS)
    assert float(jnp.max(jnp.abs(out['logits'] - ref_logits))) < 1e-3
    assert abs(float(out['loss']) - float(ref_loss)) < 1e-3

    print("KERNEL_OK")
</pallas_src>

<mosaic_0001>
module attributes {stable_mosaic.version = 11 : i64} {
  func.func @fused_bert_kernel(%arg0: i32, %arg1: memref<16x32xf32, #tpu.memory_space<vmem>>, %arg2: memref<16x16xf32, #tpu.memory_space<vmem>>, %arg3: memref<16x1xi32, #tpu.memory_space<vmem>>, %arg4: memref<1x32xf32, #tpu.memory_space<vmem>>, %arg5: memref<1x32xf32, #tpu.memory_space<vmem>>, %arg6: memref<2x32x96xf32, #tpu.memory_space<vmem>>, %arg7: memref<2x1x96xf32, #tpu.memory_space<vmem>>, %arg8: memref<2x32x32xf32, #tpu.memory_space<vmem>>, %arg9: memref<2x1x32xf32, #tpu.memory_space<vmem>>, %arg10: memref<2x1x32xf32, #tpu.memory_space<vmem>>, %arg11: memref<2x1x32xf32, #tpu.memory_space<vmem>>, %arg12: memref<2x32x64xf32, #tpu.memory_space<vmem>>, %arg13: memref<2x1x64xf32, #tpu.memory_space<vmem>>, %arg14: memref<2x64x32xf32, #tpu.memory_space<vmem>>, %arg15: memref<2x1x32xf32, #tpu.memory_space<vmem>>, %arg16: memref<2x1x32xf32, #tpu.memory_space<vmem>>, %arg17: memref<2x1x32xf32, #tpu.memory_space<vmem>>, %arg18: memref<32x2xf32, #tpu.memory_space<vmem>>, %arg19: memref<1x2xf32, #tpu.memory_space<vmem>>, %arg20: memref<16x2xf32, #tpu.memory_space<vmem>>, %arg21: memref<1x1xf32, #tpu.memory_space<vmem>>, %arg22: memref<16x32xf32, #tpu.memory_space<vmem>>) attributes {dimension_semantics = [#tpu.dimension_semantics<arbitrary>], iteration_bounds = array<i64: 1>, scalar_prefetch = 0 : i64, scratch_operands = 1 : i64, tpu.core_type = #tpu.core_type<tc>, window_params = [{pipeline_mode = #tpu.pipeline_mode<synchronous>, transform_indices = @transform_0, window_bounds = array<i64: 16, 32>}, {pipeline_mode = #tpu.pipeline_mode<synchronous>, transform_indices = @transform_1, window_bounds = array<i64: 16, 16>}, {pipeline_mode = #tpu.pipeline_mode<synchronous>, transform_indices = @transform_2, window_bounds = array<i64: 16, 1>}, {pipeline_mode = #tpu.pipeline_mode<synchronous>, transform_indices = @transform_3, window_bounds = array<i64: 1, 32>}, {pipeline_mode = #tpu.pipeline_mode<synchronous>, transform_indices = @transform_4, window_bounds = array<i64: 1, 32>}, {pipeline_mode = #tpu.pipeline_mode<synchronous>, transform_indices = @transform_5, window_bounds = array<i64: 2, 32, 96>}, {pipeline_mode = #tpu.pipeline_mode<synchronous>, transform_indices = @transform_6, window_bounds = array<i64: 2, 1, 96>}, {pipeline_mode = #tpu.pipeline_mode<synchronous>, transform_indices = @transform_7, window_bounds = array<i64: 2, 32, 32>}, {pipeline_mode = #tpu.pipeline_mode<synchronous>, transform_indices = @transform_8, window_bounds = array<i64: 2, 1, 32>}, {pipeline_mode = #tpu.pipeline_mode<synchronous>, transform_indices = @transform_9, window_bounds = array<i64: 2, 1, 32>}, {pipeline_mode = #tpu.pipeline_mode<synchronous>, transform_indices = @transform_10, window_bounds = array<i64: 2, 1, 32>}, {pipeline_mode = #tpu.pipeline_mode<synchronous>, transform_indices = @transform_11, window_bounds = array<i64: 2, 32, 64>}, {pipeline_mode = #tpu.pipeline_mode<synchronous>, transform_indices = @transform_12, window_bounds = array<i64: 2, 1, 64>}, {pipeline_mode = #tpu.pipeline_mode<synchronous>, transform_indices = @transform_13, window_bounds = array<i64: 2, 64, 32>}, {pipeline_mode = #tpu.pipeline_mode<synchronous>, transform_indices = @transform_14, window_bounds = array<i64: 2, 1, 32>}, {pipeline_mode = #tpu.pipeline_mode<synchronous>, transform_indices = @transform_15, window_bounds = array<i64: 2, 1, 32>}, {pipeline_mode = #tpu.pipeline_mode<synchronous>, transform_indices = @transform_16, window_bounds = array<i64: 2, 1, 32>}, {pipeline_mode = #tpu.pipeline_mode<synchronous>, transform_indices = @transform_17, window_bounds = array<i64: 32, 2>}, {pipeline_mode = #tpu.pipeline_mode<synchronous>, transform_indices = @transform_18, window_bounds = array<i64: 1, 2>}, {pipeline_mode = #tpu.pipeline_mode<synchronous>, transform_indices = @transform_19, window_bounds = array<i64: 16, 2>}, {pipeline_mode = #tpu.pipeline_mode<synchronous>, transform_indices = @transform_20, window_bounds = array<i64: 1, 1>}]} {
    %c0 = arith.constant 0 : index
    %c0_0 = arith.constant 0 : index
    %0 = vector.load %arg1[%c0, %c0_0] : memref<16x32xf32, #tpu.memory_space<vmem>>, vector<16x32xf32>
    %c0_1 = arith.constant 0 : index
    %c0_2 = arith.constant 0 : index
    %1 = vector.load %arg4[%c0_1, %c0_2] : memref<1x32xf32, #tpu.memory_space<vmem>>, vector<1x32xf32>
    %c0_3 = arith.constant 0 : index
    %c0_4 = arith.constant 0 : index
    %2 = vector.load %arg5[%c0_3, %c0_4] : memref<1x32xf32, #tpu.memory_space<vmem>>, vector<1x32xf32>
    %cst = arith.constant dense<0.000000e+00> : vector<16xf32>
    %3 = vector.multi_reduction <add>, %0, %cst [1] : vector<16x32xf32> to vector<16xf32>
    %4 = vector.shape_cast %3 : vector<16xf32> to vector<16x1xf32>
    %cst_5 = arith.constant 3.200000e+01 : f32
    %5 = vector.broadcast %cst_5 : f32 to vector<16x1xf32>
    %6 = arith.divf %4, %5 : vector<16x1xf32>
    %7 = vector.broadcast %6 : vector<16x1xf32> to vector<16x32xf32>
    %8 = arith.subf %0, %7 : vector<16x32xf32>
    %9 = arith.mulf %8, %8 : vector<16x32xf32>
    %cst_6 = arith.constant dense<0.000000e+00> : vector<16xf32>
    %10 = vector.multi_reduction <add>, %9, %cst_6 [1] : vector<16x32xf32> to vector<16xf32>
    %11 = vector.shape_cast %10 : vector<16xf32> to vector<16x1xf32>
    %cst_7 = arith.constant 3.200000e+01 : f32
    %12 = vector.broadcast %cst_7 : f32 to vector<16x1xf32>
    %13 = arith.divf %11, %12 : vector<16x1xf32>
    %14 = vector.broadcast %6 : vector<16x1xf32> to vector<16x32xf32>
    %15 = arith.subf %0, %14 : vector<16x32xf32>
    %cst_8 = arith.constant 9.99999996E-13 : f32
    %16 = vector.broadcast %cst_8 : f32 to vector<16x1xf32>
    %17 = arith.addf %13, %16 : vector<16x1xf32>
    %18 = math.rsqrt %17 : vector<16x1xf32>
    %19 = vector.broadcast %18 : vector<16x1xf32> to vector<16x32xf32>
    %20 = arith.mulf %15, %19 : vector<16x32xf32>
    %21 = vector.broadcast %1 : vector<1x32xf32> to vector<16x32xf32>
    %22 = arith.mulf %20, %21 : vector<16x32xf32>
    %23 = vector.broadcast %2 : vector<1x32xf32> to vector<16x32xf32>
    %24 = arith.addf %22, %23 : vector<16x32xf32>
    %c0_9 = arith.constant 0 : index
    %c0_10 = arith.constant 0 : index
    %25 = vector.load %arg2[%c0_9, %c0_10] : memref<16x16xf32, #tpu.memory_space<vmem>>, vector<16x16xf32>
    %c0_11 = arith.constant 0 : index
    %c0_12 = arith.constant 0 : index
    %c0_13 = arith.constant 0 : index
    %26 = vector.load %arg6[%c0_11, %c0_12, %c0_13] : memref<2x32x96xf32, #tpu.memory_space<vmem>>, vector<1x32x96xf32>
    %27 = vector.shape_cast %26 : vector<1x32x96xf32> to vector<32x96xf32>
    %cst_14 = arith.constant dense<0.000000e+00> : vector<16x96xf32>
    %28 = tpu.matmul %24, %27, %cst_14 {dimension_numbers = #tpu.dot_dimension_numbers<[1], [0], [0], [1], [0, 0, 1, 1], [], []>} : vector<16x32xf32>, vector<32x96xf32>, vector<16x96xf32> -> vector<16x96xf32>
    %c0_15 = arith.constant 0 : index
    %c0_16 = arith.constant 0 : index
    %c0_17 = arith.constant 0 : index
    %29 = vector.load %arg7[%c0_15, %c0_16, %c0_17] : memref<2x1x96xf32, #tpu.memory_space<vmem>>, vector<1x1x96xf32>
    %30 = vector.shape_cast %29 : vector<1x1x96xf32> to vector<1x96xf32>
    %31 = vector.broadcast %30 : vector<1x96xf32> to vector<16x96xf32>
    %32 = arith.addf %28, %31 : vector<16x96xf32>
    %33 = vector.extract_strided_slice %32 {offsets = [0, 0], sizes = [16, 32], strides = [1, 1]} : vector<16x96xf32> to vector<16x32xf32>
    %cst_18 = arith.constant 0.353553385 : f32
    %34 = vector.broadcast %cst_18 : f32 to vector<16x32xf32>
    %35 = arith.mulf %33, %34 : vector<16x32xf32>
    %36 = vector.extract_strided_slice %32 {offsets = [0, 32], sizes = [16, 32], strides = [1, 1]} : vector<16x96xf32> to vector<16x32xf32>
    %37 = vector.extract_strided_slice %32 {offsets = [0, 64], sizes = [16, 32], strides = [1, 1]} : vector<16x96xf32> to vector<16x32xf32>
    %38 = vector.extract_strided_slice %35 {offsets = [0, 0], sizes = [16, 8], strides = [1, 1]} : vector<16x32xf32> to vector<16x8xf32>
    %39 = vector.extract_strided_slice %36 {offsets = [0, 0], sizes = [16, 8], strides = [1, 1]} : vector<16x32xf32> to vector<16x8xf32>
    %cst_19 = arith.constant dense<0.000000e+00> : vector<16x16xf32>
    %40 = tpu.matmul %38, %39, %cst_19 {dimension_numbers = #tpu.dot_dimension_numbers<[1], [1], [0], [0], [0, 0, 1, 0], [], []>} : vector<16x8xf32>, vector<16x8xf32>, vector<16x16xf32> -> vector<16x16xf32>
    %41 = arith.addf %40, %25 : vector<16x16xf32>
    %cst_20 = arith.constant dense<0xFF800000> : vector<16xf32>
    %42 = vector.multi_reduction <maximumf>, %41, %cst_20 [1] : vector<16x16xf32> to vector<16xf32>
    %43 = vector.shape_cast %42 : vector<16xf32> to vector<16x1xf32>
    %44 = vector.broadcast %43 : vector<16x1xf32> to vector<16x16xf32>
    %45 = arith.subf %41, %44 : vector<16x16xf32>
    %46 = math.exp %45 : vector<16x16xf32>
    %cst_21 = arith.constant dense<0.000000e+00> : vector<16xf32>
    %47 = vector.multi_reduction <add>, %46, %cst_21 [1] : vector<16x16xf32> to vector<16xf32>
    %48 = vector.shape_cast %47 : vector<16xf32> to vector<16x1xf32>
    %49 = tpu.reciprocal %48 {approx = true} : vector<16x1xf32> -> vector<16x1xf32>
    %50 = vector.broadcast %49 : vector<16x1xf32> to vector<16x16xf32>
    %51 = arith.mulf %46, %50 : vector<16x16xf32>
    %52 = vector.extract_strided_slice %37 {offsets = [0, 0], sizes = [16, 8], strides = [1, 1]} : vector<16x32xf32> to vector<16x8xf32>
    %cst_22 = arith.constant dense<0.000000e+00> : vector<16x8xf32>
    %53 = tpu.matmul %51, %52, %cst_22 {dimension_numbers = #tpu.dot_dimension_numbers<[1], [0], [0], [1], [0, 0, 1, 1], [], []>} : vector<16x16xf32>, vector<16x8xf32>, vector<16x8xf32> -> vector<16x8xf32>
    %c0_23 = arith.constant 0 : index
    %c0_24 = arith.constant 0 : index
    %54 = vector.load %arg22[%c0_23, %c0_24] : memref<16x32xf32, #tpu.memory_space<vmem>>, vector<16x8xf32>
    tpu.vector_store %arg22[%c0_23, %c0_24], %53 {strides = array<i32>} : memref<16x32xf32, #tpu.memory_space<vmem>>, vector<16x8xf32>,
    %55 = vector.extract_strided_slice %35 {offsets = [0, 8], sizes = [16, 8], strides = [1, 1]} : vector<16x32xf32> to vector<16x8xf32>
    %56 = vector.extract_strided_slice %36 {offsets = [0, 8], sizes = [16, 8], strides = [1, 1]} : vector<16x32xf32> to vector<16x8xf32>
    %cst_25 = arith.constant dense<0.000000e+00> : vector<16x16xf32>
    %57 = tpu.matmul %55, %56, %cst_25 {dimension_numbers = #tpu.dot_dimension_numbers<[1], [1], [0], [0], [0, 0, 1, 0], [], []>} : vector<16x8xf32>, vector<16x8xf32>, vector<16x16xf32> -> vector<16x16xf32>
    %58 = arith.addf %57, %25 : vector<16x16xf32>
    %cst_26 = arith.constant dense<0xFF800000> : vector<16xf32>
    %59 = vector.multi_reduction <maximumf>, %58, %cst_26 [1] : vector<16x16xf32> to vector<16xf32>
    %60 = vector.shape_cast %59 : vector<16xf32> to vector<16x1xf32>
    %61 = vector.broadcast %60 : vector<16x1xf32> to vector<16x16xf32>
    %62 = arith.subf %58, %61 : vector<16x16xf32>
    %63 = math.exp %62 : vector<16x16xf32>
    %cst_27 = arith.constant dense<0.000000e+00> : vector<16xf32>
    %64 = vector.multi_reduction <add>, %63, %cst_27 [1] : vector<16x16xf32> to vector<16xf32>
    %65 = vector.shape_cast %64 : vector<16xf32> to vector<16x1xf32>
    %66 = tpu.reciprocal %65 {approx = true} : vector<16x1xf32> -> vector<16x1xf32>
    %67 = vector.broadcast %66 : vector<16x1xf32> to vector<16x16xf32>
    %68 = arith.mulf %63, %67 : vector<16x16xf32>
    %69 = vector.extract_strided_slice %37 {offsets = [0, 8], sizes = [16, 8], strides = [1, 1]} : vector<16x32xf32> to vector<16x8xf32>
    %cst_28 = arith.constant dense<0.000000e+00> : vector<16x8xf32>
    %70 = tpu.matmul %68, %69, %cst_28 {dimension_numbers = #tpu.dot_dimension_numbers<[1], [0], [0], [1], [0, 0, 1, 1], [], []>} : vector<16x16xf32>, vector<16x8xf32>, vector<16x8xf32> -> vector<16x8xf32>
    %c0_29 = arith.constant 0 : index
    %c8 = arith.constant 8 : index
    %71 = vector.load %arg22[%c0_29, %c8] : memref<16x32xf32, #tpu.memory_space<vmem>>, vector<16x8xf32>
    tpu.vector_store %arg22[%c0_29, %c8], %70 {strides = array<i32>} : memref<16x32xf32, #tpu.memory_space<vmem>>, vector<16x8xf32>,
    %72 = vector.extract_strided_slice %35 {offsets = [0, 16], sizes = [16, 8], strides = [1, 1]} : vector<16x32xf32> to vector<16x8xf32>
    %73 = vector.extract_strided_slice %36 {offsets = [0, 16], sizes = [16, 8], strides = [1, 1]} : vector<16x32xf32> to vector<16x8xf32>
    %cst_30 = arith.constant dense<0.000000e+00> : vector<16x16xf32>
    %74 = tpu.matmul %72, %73, %cst_30 {dimension_numbers = #tpu.dot_dimension_numbers<[1], [1], [0], [0], [0, 0, 1, 0], [], []>} : vector<16x8xf32>, vector<16x8xf32>, vector<16x16xf32> -> vector<16x16xf32>
    %75 = arith.addf %74, %25 : vector<16x16xf32>
    %cst_31 = arith.constant dense<0xFF800000> : vector<16xf32>
    %76 = vector.multi_reduction <maximumf>, %75, %cst_31 [1] : vector<16x16xf32> to vector<16xf32>
    %77 = vector.shape_cast %76 : vector<16xf32> to vector<16x1xf32>
    %78 = vector.broadcast %77 : vector<16x1xf32> to vector<16x16xf32>
    %79 = arith.subf %75, %78 : vector<16x16xf32>
    %80 = math.exp %79 : vector<16x16xf32>
    %cst_32 = arith.constant dense<0.000000e+00> : vector<16xf32>
    %81 = vector.multi_reduction <add>, %80, %cst_32 [1] : vector<16x16xf32> to vector<16xf32>
    %82 = vector.shape_cast %81 : vector<16xf32> to vector<16x1xf32>
    %83 = tpu.reciprocal %82 {approx = true} : vector<16x1xf32> -> vector<16x1xf32>
    %84 = vector.broadcast %83 : vector<16x1xf32> to vector<16x16xf32>
    %85 = arith.mulf %80, %84 : vector<16x16xf32>
    %86 = vector.extract_strided_slice %37 {offsets = [0, 16], sizes = [16, 8], strides = [1, 1]} : vector<16x32xf32> to vector<16x8xf32>
    %cst_33 = arith.constant dense<0.000000e+00> : vector<16x8xf32>
    %87 = tpu.matmul %85, %86, %cst_33 {dimension_numbers = #tpu.dot_dimension_numbers<[1], [0], [0], [1], [0, 0, 1, 1], [], []>} : vector<16x16xf32>, vector<16x8xf32>, vector<16x8xf32> -> vector<16x8xf32>
    %c0_34 = arith.constant 0 : index
    %c16 = arith.constant 16 : index
    %88 = vector.load %arg22[%c0_34, %c16] : memref<16x32xf32, #tpu.memory_space<vmem>>, vector<16x8xf32>
    tpu.vector_store %arg22[%c0_34, %c16], %87 {strides = array<i32>} : memref<16x32xf32, #tpu.memory_space<vmem>>, vector<16x8xf32>,
    %89 = vector.extract_strided_slice %35 {offsets = [0, 24], sizes = [16, 8], strides = [1, 1]} : vector<16x32xf32> to vector<16x8xf32>
    %90 = vector.extract_strided_slice %36 {offsets = [0, 24], sizes = [16, 8], strides = [1, 1]} : vector<16x32xf32> to vector<16x8xf32>
    %cst_35 = arith.constant dense<0.000000e+00> : vector<16x16xf32>
    %91 = tpu.matmul %89, %90, %cst_35 {dimension_numbers = #tpu.dot_dimension_numbers<[1], [1], [0], [0], [0, 0, 1, 0], [], []>} : vector<16x8xf32>, vector<16x8xf32>, vector<16x16xf32> -> vector<16x16xf32>
    %92 = arith.addf %91, %25 : vector<16x16xf32>
    %cst_36 = arith.constant dense<0xFF800000> : vector<16xf32>
    %93 = vector.multi_reduction <maximumf>, %92, %cst_36 [1] : vector<16x16xf32> to vector<16xf32>
    %94 = vector.shape_cast %93 : vector<16xf32> to vector<16x1xf32>
    %95 = vector.broadcast %94 : vector<16x1xf32> to vector<16x16xf32>
    %96 = arith.subf %92, %95 : vector<16x16xf32>
    %97 = math.exp %96 : vector<16x16xf32>
    %cst_37 = arith.constant dense<0.000000e+00> : vector<16xf32>
    %98 = vector.multi_reduction <add>, %97, %cst_37 [1] : vector<16x16xf32> to vector<16xf32>
    %99 = vector.shape_cast %98 : vector<16xf32> to vector<16x1xf32>
    %100 = tpu.reciprocal %99 {approx = true} : vector<16x1xf32> -> vector<16x1xf32>
    %101 = vector.broadcast %100 : vector<16x1xf32> to vector<16x16xf32>
    %102 = arith.mulf %97, %101 : vector<16x16xf32>
    %103 = vector.extract_strided_slice %37 {offsets = [0, 24], sizes = [16, 8], strides = [1, 1]} : vector<16x32xf32> to vector<16x8xf32>
    %cst_38 = arith.constant dense<0.000000e+00> : vector<16x8xf32>
    %104 = tpu.matmul %102, %103, %cst_38 {dimension_numbers = #tpu.dot_dimension_numbers<[1], [0], [0], [1], [0, 0, 1, 1], [], []>} : vector<16x16xf32>, vector<16x8xf32>, vector<16x8xf32> -> vector<16x8xf32>
    %c0_39 = arith.constant 0 : index
    %c24 = arith.constant 24 : index
    %105 = vector.load %arg22[%c0_39, %c24] : memref<16x32xf32, #tpu.memory_space<vmem>>, vector<16x8xf32>
    tpu.vector_store %arg22[%c0_39, %c24], %104 {strides = array<i32>} : memref<16x32xf32, #tpu.memory_space<vmem>>, vector<16x8xf32>,
    %c0_40 = arith.constant 0 : index
    %c0_41 = arith.constant 0 : index
    %106 = vector.load %arg22[%c0_40, %c0_41] : memref<16x32xf32, #tpu.memory_space<vmem>>, vector<16x32xf32>
    %c0_42 = arith.constant 0 : index
    %c0_43 = arith.constant 0 : index
    %c0_44 = arith.constant 0 : index
    %107 = vector.load %arg8[%c0_42, %c0_43, %c0_44] : memref<2x32x32xf32, #tpu.memory_space<vmem>>, vector<1x32x32xf32>
    %108 = vector.shape_cast %107 : vector<1x32x32xf32> to vector<32x32xf32>
    %cst_45 = arith.constant dense<0.000000e+00> : vector<16x32xf32>
    %109 = tpu.matmul %106, %108, %cst_45 {dimension_numbers = #tpu.dot_dimension_numbers<[1], [0], [0], [1], [0, 0, 1, 1], [], []>} : vector<16x32xf32>, vector<32x32xf32>, vector<16x32xf32> -> vector<16x32xf32>
    %c0_46 = arith.constant 0 : index
    %c0_47 = arith.constant 0 : index
    %c0_48 = arith.constant 0 : index
    %110 = vector.load %arg9[%c0_46, %c0_47, %c0_48] : memref<2x1x32xf32, #tpu.memory_space<vmem>>, vector<1x1x32xf32>
    %111 = vector.shape_cast %110 : vector<1x1x32xf32> to vector<1x32xf32>
    %112 = vector.broadcast %111 : vector<1x32xf32> to vector<16x32xf32>
    %113 = arith.addf %109, %112 : vector<16x32xf32>
    %114 = arith.addf %24, %113 : vector<16x32xf32>
    %c0_49 = arith.constant 0 : index
    %c0_50 = arith.constant 0 : index
    %c0_51 = arith.constant 0 : index
    %115 = vector.load %arg10[%c0_49, %c0_50, %c0_51] : memref<2x1x32xf32, #tpu.memory_space<vmem>>, vector<1x1x32xf32>
    %116 = vector.shape_cast %115 : vector<1x1x32xf32> to vector<1x32xf32>
    %c0_52 = arith.constant 0 : index
    %c0_53 = arith.constant 0 : index
    %c0_54 = arith.constant 0 : index
    %117 = vector.load %arg11[%c0_52, %c0_53, %c0_54] : memref<2x1x32xf32, #tpu.memory_space<vmem>>, vector<1x1x32xf32>
    %118 = vector.shape_cast %117 : vector<1x1x32xf32> to vector<1x32xf32>
    %cst_55 = arith.constant dense<0.000000e+00> : vector<16xf32>
    %119 = vector.multi_reduction <add>, %114, %cst_55 [1] : vector<16x32xf32> to vector<16xf32>
    %120 = vector.shape_cast %119 : vector<16xf32> to vector<16x1xf32>
    %cst_56 = arith.constant 3.200000e+01 : f32
    %121 = vector.broadcast %cst_56 : f32 to vector<16x1xf32>
    %122 = arith.divf %120, %121 : vector<16x1xf32>
    %123 = vector.broadcast %122 : vector<16x1xf32> to vector<16x32xf32>
    %124 = arith.subf %114, %123 : vector<16x32xf32>
    %125 = arith.mulf %124, %124 : vector<16x32xf32>
    %cst_57 = arith.constant dense<0.000000e+00> : vector<16xf32>
    %126 = vector.multi_reduction <add>, %125, %cst_57 [1] : vector<16x32xf32> to vector<16xf32>
    %127 = vector.shape_cast %126 : vector<16xf32> to vector<16x1xf32>
    %cst_58 = arith.constant 3.200000e+01 : f32
    %128 = vector.broadcast %cst_58 : f32 to vector<16x1xf32>
    %129 = arith.divf %127, %128 : vector<16x1xf32>
    %130 = vector.broadcast %122 : vector<16x1xf32> to vector<16x32xf32>
    %131 = arith.subf %114, %130 : vector<16x32xf32>
    %cst_59 = arith.constant 9.99999996E-13 : f32
    %132 = vector.broadcast %cst_59 : f32 to vector<16x1xf32>
    %133 = arith.addf %129, %132 : vector<16x1xf32>
    %134 = math.rsqrt %133 : vector<16x1xf32>
    %135 = vector.broadcast %134 : vector<16x1xf32> to vector<16x32xf32>
    %136 = arith.mulf %131, %135 : vector<16x32xf32>
    %137 = vector.broadcast %116 : vector<1x32xf32> to vector<16x32xf32>
    %138 = arith.mulf %136, %137 : vector<16x32xf32>
    %139 = vector.broadcast %118 : vector<1x32xf32> to vector<16x32xf32>
    %140 = arith.addf %138, %139 : vector<16x32xf32>
    %c0_60 = arith.constant 0 : index
    %c0_61 = arith.constant 0 : index
    %c0_62 = arith.constant 0 : index
    %141 = vector.load %arg12[%c0_60, %c0_61, %c0_62] : memref<2x32x64xf32, #tpu.memory_space<vmem>>, vector<1x32x64xf32>
    %142 = vector.shape_cast %141 : vector<1x32x64xf32> to vector<32x64xf32>
    %cst_63 = arith.constant dense<0.000000e+00> : vector<16x64xf32>
    %143 = tpu.matmul %140, %142, %cst_63 {dimension_numbers = #tpu.dot_dimension_numbers<[1], [0], [0], [1], [0, 0, 1, 1], [], []>} : vector<16x32xf32>, vector<32x64xf32>, vector<16x64xf32> -> vector<16x64xf32>
    %c0_64 = arith.constant 0 : index
    %c0_65 = arith.constant 0 : index
    %c0_66 = arith.constant 0 : index
    %144 = vector.load %arg13[%c0_64, %c0_65, %c0_66] : memref<2x1x64xf32, #tpu.memory_space<vmem>>, vector<1x1x64xf32>
    %145 = vector.shape_cast %144 : vector<1x1x64xf32> to vector<1x64xf32>
    %146 = vector.broadcast %145 : vector<1x64xf32> to vector<16x64xf32>
    %147 = arith.addf %143, %146 : vector<16x64xf32>
    %148 = arith.mulf %147, %147 : vector<16x64xf32>
    %149 = arith.mulf %147, %148 : vector<16x64xf32>
    %cst_67 = arith.constant 4.471500e-02 : f32
    %150 = vector.broadcast %cst_67 : f32 to vector<16x64xf32>
    %151 = arith.mulf %150, %149 : vector<16x64xf32>
    %152 = arith.addf %147, %151 : vector<16x64xf32>
    %cst_68 = arith.constant 0.797884583 : f32
    %153 = vector.broadcast %cst_68 : f32 to vector<16x64xf32>
    %154 = arith.mulf %153, %152 : vector<16x64xf32>
    %155 = math.tanh %154 : vector<16x64xf32>
    %cst_69 = arith.constant 1.000000e+00 : f32
    %156 = vector.broadcast %cst_69 : f32 to vector<16x64xf32>
    %157 = arith.addf %156, %155 : vector<16x64xf32>
    %cst_70 = arith.constant 5.000000e-01 : f32
    %158 = vector.broadcast %cst_70 : f32 to vector<16x64xf32>
    %159 = arith.mulf %158, %157 : vector<16x64xf32>
    %160 = arith.mulf %147, %159 : vector<16x64xf32>
    %c0_71 = arith.constant 0 : index
    %c0_72 = arith.constant 0 : index
    %c0_73 = arith.constant 0 : index
    %161 = vector.load %arg14[%c0_71, %c0_72, %c0_73] : memref<2x64x32xf32, #tpu.memory_space<vmem>>, vector<1x64x32xf32>
    %162 = vector.shape_cast %161 : vector<1x64x32xf32> to vector<64x32xf32>
    %cst_74 = arith.constant dense<0.000000e+00> : vector<16x32xf32>
    %163 = tpu.matmul %160, %162, %cst_74 {dimension_numbers = #tpu.dot_dimension_numbers<[1], [0], [0], [1], [0, 0, 1, 1], [], []>} : vector<16x64xf32>, vector<64x32xf32>, vector<16x32xf32> -> vector<16x32xf32>
    %c0_75 = arith.constant 0 : index
    %c0_76 = arith.constant 0 : index
    %c0_77 = arith.constant 0 : index
    %164 = vector.load %arg15[%c0_75, %c0_76, %c0_77] : memref<2x1x32xf32, #tpu.memory_space<vmem>>, vector<1x1x32xf32>
    %165 = vector.shape_cast %164 : vector<1x1x32xf32> to vector<1x32xf32>
    %166 = vector.broadcast %165 : vector<1x32xf32> to vector<16x32xf32>
    %167 = arith.addf %163, %166 : vector<16x32xf32>
    %168 = arith.addf %140, %167 : vector<16x32xf32>
    %c0_78 = arith.constant 0 : index
    %c0_79 = arith.constant 0 : index
    %c0_80 = arith.constant 0 : index
    %169 = vector.load %arg16[%c0_78, %c0_79, %c0_80] : memref<2x1x32xf32, #tpu.memory_space<vmem>>, vector<1x1x32xf32>
    %170 = vector.shape_cast %169 : vector<1x1x32xf32> to vector<1x32xf32>
    %c0_81 = arith.constant 0 : index
    %c0_82 = arith.constant 0 : index
    %c0_83 = arith.constant 0 : index
    %171 = vector.load %arg17[%c0_81, %c0_82, %c0_83] : memref<2x1x32xf32, #tpu.memory_space<vmem>>, vector<1x1x32xf32>
    %172 = vector.shape_cast %171 : vector<1x1x32xf32> to vector<1x32xf32>
    %cst_84 = arith.constant dense<0.000000e+00> : vector<16xf32>
    %173 = vector.multi_reduction <add>, %168, %cst_84 [1] : vector<16x32xf32> to vector<16xf32>
    %174 = vector.shape_cast %173 : vector<16xf32> to vector<16x1xf32>
    %cst_85 = arith.constant 3.200000e+01 : f32
    %175 = vector.broadcast %cst_85 : f32 to vector<16x1xf32>
    %176 = arith.divf %174, %175 : vector<16x1xf32>
    %177 = vector.broadcast %176 : vector<16x1xf32> to vector<16x32xf32>
    %178 = arith.subf %168, %177 : vector<16x32xf32>
    %179 = arith.mulf %178, %178 : vector<16x32xf32>
    %cst_86 = arith.constant dense<0.000000e+00> : vector<16xf32>
    %180 = vector.multi_reduction <add>, %179, %cst_86 [1] : vector<16x32xf32> to vector<16xf32>
    %181 = vector.shape_cast %180 : vector<16xf32> to vector<16x1xf32>
    %cst_87 = arith.constant 3.200000e+01 : f32
    %182 = vector.broadcast %cst_87 : f32 to vector<16x1xf32>
    %183 = arith.divf %181, %182 : vector<16x1xf32>
    %184 = vector.broadcast %176 : vector<16x1xf32> to vector<16x32xf32>
    %185 = arith.subf %168, %184 : vector<16x32xf32>
    %cst_88 = arith.constant 9.99999996E-13 : f32
    %186 = vector.broadcast %cst_88 : f32 to vector<16x1xf32>
    %187 = arith.addf %183, %186 : vector<16x1xf32>
    %188 = math.rsqrt %187 : vector<16x1xf32>
    %189 = vector.broadcast %188 : vector<16x1xf32> to vector<16x32xf32>
    %190 = arith.mulf %185, %189 : vector<16x32xf32>
    %191 = vector.broadcast %170 : vector<1x32xf32> to vector<16x32xf32>
    %192 = arith.mulf %190, %191 : vector<16x32xf32>
    %193 = vector.broadcast %172 : vector<1x32xf32> to vector<16x32xf32>
    %194 = arith.addf %192, %193 : vector<16x32xf32>
    %c1 = arith.constant 1 : index
    %c0_89 = arith.constant 0 : index
    %c0_90 = arith.constant 0 : index
    %195 = vector.load %arg6[%c1, %c0_89, %c0_90] : memref<2x32x96xf32, #tpu.memory_space<vmem>>, vector<1x32x96xf32>
    %196 = vector.shape_cast %195 : vector<1x32x96xf32> to vector<32x96xf32>
    %cst_91 = arith.constant dense<0.000000e+00> : vector<16x96xf32>
    %197 = tpu.matmul %194, %196, %cst_91 {dimension_numbers = #tpu.dot_dimension_numbers<[1], [0], [0], [1], [0, 0, 1, 1], [], []>} : vector<16x32xf32>, vector<32x96xf32>, vector<16x96xf32> -> vector<16x96xf32>
    %c1_92 = arith.constant 1 : index
    %c0_93 = arith.constant 0 : index
    %c0_94 = arith.constant 0 : index
    %198 = vector.load %arg7[%c1_92, %c0_93, %c0_94] : memref<2x1x96xf32, #tpu.memory_space<vmem>>, vector<1x1x96xf32>
    %199 = vector.shape_cast %198 : vector<1x1x96xf32> to vector<1x96xf32>
    %200 = vector.broadcast %199 : vector<1x96xf32> to vector<16x96xf32>
    %201 = arith.addf %197, %200 : vector<16x96xf32>
    %202 = vector.extract_strided_slice %201 {offsets = [0, 0], sizes = [16, 32], strides = [1, 1]} : vector<16x96xf32> to vector<16x32xf32>
    %cst_95 = arith.constant 0.353553385 : f32
    %203 = vector.broadcast %cst_95 : f32 to vector<16x32xf32>
    %204 = arith.mulf %202, %203 : vector<16x32xf32>
    %205 = vector.extract_strided_slice %201 {offsets = [0, 32], sizes = [16, 32], strides = [1, 1]} : vector<16x96xf32> to vector<16x32xf32>
    %206 = vector.extract_strided_slice %201 {offsets = [0, 64], sizes = [16, 32], strides = [1, 1]} : vector<16x96xf32> to vector<16x32xf32>
    %207 = vector.extract_strided_slice %204 {offsets = [0, 0], sizes = [16, 8], strides = [1, 1]} : vector<16x32xf32> to vector<16x8xf32>
    %208 = vector.extract_strided_slice %205 {offsets = [0, 0], sizes = [16, 8], strides = [1, 1]} : vector<16x32xf32> to vector<16x8xf32>
    %cst_96 = arith.constant dense<0.000000e+00> : vector<16x16xf32>
    %209 = tpu.matmul %207, %208, %cst_96 {dimension_numbers = #tpu.dot_dimension_numbers<[1], [1], [0], [0], [0, 0, 1, 0], [], []>} : vector<16x8xf32>, vector<16x8xf32>, vector<16x16xf32> -> vector<16x16xf32>
    %210 = arith.addf %209, %25 : vector<16x16xf32>
    %cst_97 = arith.constant dense<0xFF800000> : vector<16xf32>
    %211 = vector.multi_reduction <maximumf>, %210, %cst_97 [1] : vector<16x16xf32> to vector<16xf32>
    %212 = vector.shape_cast %211 : vector<16xf32> to vector<16x1xf32>
    %213 = vector.broadcast %212 : vector<16x1xf32> to vector<16x16xf32>
    %214 = arith.subf %210, %213 : vector<16x16xf32>
    %215 = math.exp %214 : vector<16x16xf32>
    %cst_98 = arith.constant dense<0.000000e+00> : vector<16xf32>
    %216 = vector.multi_reduction <add>, %215, %cst_98 [1] : vector<16x16xf32> to vector<16xf32>
    %217 = vector.shape_cast %216 : vector<16xf32> to vector<16x1xf32>
    %218 = tpu.reciprocal %217 {approx = true} : vector<16x1xf32> -> vector<16x1xf32>
    %219 = vector.broadcast %218 : vector<16x1xf32> to vector<16x16xf32>
    %220 = arith.mulf %215, %219 : vector<16x16xf32>
    %221 = vector.extract_strided_slice %206 {offsets = [0, 0], sizes = [16, 8], strides = [1, 1]} : vector<16x32xf32> to vector<16x8xf32>
    %cst_99 = arith.constant dense<0.000000e+00> : vector<16x8xf32>
    %222 = tpu.matmul %220, %221, %cst_99 {dimension_numbers = #tpu.dot_dimension_numbers<[1], [0], [0], [1], [0, 0, 1, 1], [], []>} : vector<16x16xf32>, vector<16x8xf32>, vector<16x8xf32> -> vector<16x8xf32>
    %c0_100 = arith.constant 0 : index
    %c0_101 = arith.constant 0 : index
    %223 = vector.load %arg22[%c0_100, %c0_101] : memref<16x32xf32, #tpu.memory_space<vmem>>, vector<16x8xf32>
    tpu.vector_store %arg22[%c0_100, %c0_101], %222 {strides = array<i32>} : memref<16x32xf32, #tpu.memory_space<vmem>>, vector<16x8xf32>,
    %224 = vector.extract_strided_slice %204 {offsets = [0, 8], sizes = [16, 8], strides = [1, 1]} : vector<16x32xf32> to vector<16x8xf32>
    %225 = vector.extract_strided_slice %205 {offsets = [0, 8], sizes = [16, 8], strides = [1, 1]} : vector<16x32xf32> to vector<16x8xf32>
    %cst_102 = arith.constant dense<0.000000e+00> : vector<16x16xf32>
    %226 = tpu.matmul %224, %225, %cst_102 {dimension_numbers = #tpu.dot_dimension_numbers<[1], [1], [0], [0], [0, 0, 1, 0], [], []>} : vector<16x8xf32>, vector<16x8xf32>, vector<16x16xf32> -> vector<16x16xf32>
    %227 = arith.addf %226, %25 : vector<16x16xf32>
    %cst_103 = arith.constant dense<0xFF800000> : vector<16xf32>
    %228 = vector.multi_reduction <maximumf>, %227, %cst_103 [1] : vector<16x16xf32> to vector<16xf32>
    %229 = vector.shape_cast %228 : vector<16xf32> to vector<16x1xf32>
    %230 = vector.broadcast %229 : vector<16x1xf32> to vector<16x16xf32>
    %231 = arith.subf %227, %230 : vector<16x16xf32>
    %232 = math.exp %231 : vector<16x16xf32>
    %cst_104 = arith.constant dense<0.000000e+00> : vector<16xf32>
    %233 = vector.multi_reduction <add>, %232, %cst_104 [1] : vector<16x16xf32> to vector<16xf32>
    %234 = vector.shape_cast %233 : vector<16xf32> to vector<16x1xf32>
    %235 = tpu.reciprocal %234 {approx = true} : vector<16x1xf32> -> vector<16x1xf32>
    %236 = vector.broadcast %235 : vector<16x1xf32> to vector<16x16xf32>
    %237 = arith.mulf %232, %236 : vector<16x16xf32>
    %238 = vector.extract_strided_slice %206 {offsets = [0, 8], sizes = [16, 8], strides = [1, 1]} : vector<16x32xf32> to vector<16x8xf32>
    %cst_105 = arith.constant dense<0.000000e+00> : vector<16x8xf32>
    %239 = tpu.matmul %237, %238, %cst_105 {dimension_numbers = #tpu.dot_dimension_numbers<[1], [0], [0], [1], [0, 0, 1, 1], [], []>} : vector<16x16xf32>, vector<16x8xf32>, vector<16x8xf32> -> vector<16x8xf32>
    %c0_106 = arith.constant 0 : index
    %c8_107 = arith.constant 8 : index
    %240 = vector.load %arg22[%c0_106, %c8_107] : memref<16x32xf32, #tpu.memory_space<vmem>>, vector<16x8xf32>
    tpu.vector_store %arg22[%c0_106, %c8_107], %239 {strides = array<i32>} : memref<16x32xf32, #tpu.memory_space<vmem>>, vector<16x8xf32>,
    %241 = vector.extract_strided_slice %204 {offsets = [0, 16], sizes = [16, 8], strides = [1, 1]} : vector<16x32xf32> to vector<16x8xf32>
    %242 = vector.extract_strided_slice %205 {offsets = [0, 16], sizes = [16, 8], strides = [1, 1]} : vector<16x32xf32> to vector<16x8xf32>
    %cst_108 = arith.constant dense<0.000000e+00> : vector<16x16xf32>
    %243 = tpu.matmul %241, %242, %cst_108 {dimension_numbers = #tpu.dot_dimension_numbers<[1], [1], [0], [0], [0, 0, 1, 0], [], []>} : vector<16x8xf32>, vector<16x8xf32>, vector<16x16xf32> -> vector<16x16xf32>
    %244 = arith.addf %243, %25 : vector<16x16xf32>
    %cst_109 = arith.constant dense<0xFF800000> : vector<16xf32>
    %245 = vector.multi_reduction <maximumf>, %244, %cst_109 [1] : vector<16x16xf32> to vector<16xf32>
    %246 = vector.shape_cast %245 : vector<16xf32> to vector<16x1xf32>
    %247 = vector.broadcast %246 : vector<16x1xf32> to vector<16x16xf32>
    %248 = arith.subf %244, %247 : vector<16x16xf32>
    %249 = math.exp %248 : vector<16x16xf32>
    %cst_110 = arith.constant dense<0.000000e+00> : vector<16xf32>
    %250 = vector.multi_reduction <add>, %249, %cst_110 [1] : vector<16x16xf32> to vector<16xf32>
    %251 = vector.shape_cast %250 : vector<16xf32> to vector<16x1xf32>
    %252 = tpu.reciprocal %251 {approx = true} : vector<16x1xf32> -> vector<16x1xf32>
    %253 = vector.broadcast %252 : vector<16x1xf32> to vector<16x16xf32>
    %254 = arith.mulf %249, %253 : vector<16x16xf32>
    %255 = vector.extract_strided_slice %206 {offsets = [0, 16], sizes = [16, 8], strides = [1, 1]} : vector<16x32xf32> to vector<16x8xf32>
    %cst_111 = arith.constant dense<0.000000e+00> : vector<16x8xf32>
    %256 = tpu.matmul %254, %255, %cst_111 {dimension_numbers = #tpu.dot_dimension_numbers<[1], [0], [0], [1], [0, 0, 1, 1], [], []>} : vector<16x16xf32>, vector<16x8xf32>, vector<16x8xf32> -> vector<16x8xf32>
    %c0_112 = arith.constant 0 : index
    %c16_113 = arith.constant 16 : index
    %257 = vector.load %arg22[%c0_112, %c16_113] : memref<16x32xf32, #tpu.memory_space<vmem>>, vector<16x8xf32>
    tpu.vector_store %arg22[%c0_112, %c16_113], %256 {strides = array<i32>} : memref<16x32xf32, #tpu.memory_space<vmem>>, vector<16x8xf32>,
    %258 = vector.extract_strided_slice %204 {offsets = [0, 24], sizes = [16, 8], strides = [1, 1]} : vector<16x32xf32> to vector<16x8xf32>
    %259 = vector.extract_strided_slice %205 {offsets = [0, 24], sizes = [16, 8], strides = [1, 1]} : vector<16x32xf32> to vector<16x8xf32>
    %cst_114 = arith.constant dense<0.000000e+00> : vector<16x16xf32>
    %260 = tpu.matmul %258, %259, %cst_114 {dimension_numbers = #tpu.dot_dimension_numbers<[1], [1], [0], [0], [0, 0, 1, 0], [], []>} : vector<16x8xf32>, vector<16x8xf32>, vector<16x16xf32> -> vector<16x16xf32>
    %261 = arith.addf %260, %25 : vector<16x16xf32>
    %cst_115 = arith.constant dense<0xFF800000> : vector<16xf32>
    %262 = vector.multi_reduction <maximumf>, %261, %cst_115 [1] : vector<16x16xf32> to vector<16xf32>
    %263 = vector.shape_cast %262 : vector<16xf32> to vector<16x1xf32>
    %264 = vector.broadcast %263 : vector<16x1xf32> to vector<16x16xf32>
    %265 = arith.subf %261, %264 : vector<16x16xf32>
    %266 = math.exp %265 : vector<16x16xf32>
    %cst_116 = arith.constant dense<0.000000e+00> : vector<16xf32>
    %267 = vector.multi_reduction <add>, %266, %cst_116 [1] : vector<16x16xf32> to vector<16xf32>
    %268 = vector.shape_cast %267 : vector<16xf32> to vector<16x1xf32>
    %269 = tpu.reciprocal %268 {approx = true} : vector<16x1xf32> -> vector<16x1xf32>
    %270 = vector.broadcast %269 : vector<16x1xf32> to vector<16x16xf32>
    %271 = arith.mulf %266, %270 : vector<16x16xf32>
    %272 = vector.extract_strided_slice %206 {offsets = [0, 24], sizes = [16, 8], strides = [1, 1]} : vector<16x32xf32> to vector<16x8xf32>
    %cst_117 = arith.constant dense<0.000000e+00> : vector<16x8xf32>
    %273 = tpu.matmul %271, %272, %cst_117 {dimension_numbers = #tpu.dot_dimension_numbers<[1], [0], [0], [1], [0, 0, 1, 1], [], []>} : vector<16x16xf32>, vector<16x8xf32>, vector<16x8xf32> -> vector<16x8xf32>
    %c0_118 = arith.constant 0 : index
    %c24_119 = arith.constant 24 : index
    %274 = vector.load %arg22[%c0_118, %c24_119] : memref<16x32xf32, #tpu.memory_space<vmem>>, vector<16x8xf32>
    tpu.vector_store %arg22[%c0_118, %c24_119], %273 {strides = array<i32>} : memref<16x32xf32, #tpu.memory_space<vmem>>, vector<16x8xf32>,
    %c0_120 = arith.constant 0 : index
    %c0_121 = arith.constant 0 : index
    %275 = vector.load %arg22[%c0_120, %c0_121] : memref<16x32xf32, #tpu.memory_space<vmem>>, vector<16x32xf32>
    %c1_122 = arith.constant 1 : index
    %c0_123 = arith.constant 0 : index
    %c0_124 = arith.constant 0 : index
    %276 = vector.load %arg8[%c1_122, %c0_123, %c0_124] : memref<2x32x32xf32, #tpu.memory_space<vmem>>, vector<1x32x32xf32>
    %277 = vector.shape_cast %276 : vector<1x32x32xf32> to vector<32x32xf32>
    %cst_125 = arith.constant dense<0.000000e+00> : vector<16x32xf32>
    %278 = tpu.matmul %275, %277, %cst_125 {dimension_numbers = #tpu.dot_dimension_numbers<[1], [0], [0], [1], [0, 0, 1, 1], [], []>} : vector<16x32xf32>, vector<32x32xf32>, vector<16x32xf32> -> vector<16x32xf32>
    %c1_126 = arith.constant 1 : index
    %c0_127 = arith.constant 0 : index
    %c0_128 = arith.constant 0 : index
    %279 = vector.load %arg9[%c1_126, %c0_127, %c0_128] : memref<2x1x32xf32, #tpu.memory_space<vmem>>, vector<1x1x32xf32>
    %280 = vector.shape_cast %279 : vector<1x1x32xf32> to vector<1x32xf32>
    %281 = vector.broadcast %280 : vector<1x32xf32> to vector<16x32xf32>
    %282 = arith.addf %278, %281 : vector<16x32xf32>
    %283 = arith.addf %194, %282 : vector<16x32xf32>
    %c1_129 = arith.constant 1 : index
    %c0_130 = arith.constant 0 : index
    %c0_131 = arith.constant 0 : index
    %284 = vector.load %arg10[%c1_129, %c0_130, %c0_131] : memref<2x1x32xf32, #tpu.memory_space<vmem>>, vector<1x1x32xf32>
    %285 = vector.shape_cast %284 : vector<1x1x32xf32> to vector<1x32xf32>
    %c1_132 = arith.constant 1 : index
    %c0_133 = arith.constant 0 : index
    %c0_134 = arith.constant 0 : index
    %286 = vector.load %arg11[%c1_132, %c0_133, %c0_134] : memref<2x1x32xf32, #tpu.memory_space<vmem>>, vector<1x1x32xf32>
    %287 = vector.shape_cast %286 : vector<1x1x32xf32> to vector<1x32xf32>
    %cst_135 = arith.constant dense<0.000000e+00> : vector<16xf32>
    %288 = vector.multi_reduction <add>, %283, %cst_135 [1] : vector<16x32xf32> to vector<16xf32>
    %289 = vector.shape_cast %288 : vector<16xf32> to vector<16x1xf32>
    %cst_136 = arith.constant 3.200000e+01 : f32
    %290 = vector.broadcast %cst_136 : f32 to vector<16x1xf32>
    %291 = arith.divf %289, %290 : vector<16x1xf32>
    %292 = vector.broadcast %291 : vector<16x1xf32> to vector<16x32xf32>
    %293 = arith.subf %283, %292 : vector<16x32xf32>
    %294 = arith.mulf %293, %293 : vector<16x32xf32>
    %cst_137 = arith.constant dense<0.000000e+00> : vector<16xf32>
    %295 = vector.multi_reduction <add>, %294, %cst_137 [1] : vector<16x32xf32> to vector<16xf32>
    %296 = vector.shape_cast %295 : vector<16xf32> to vector<16x1xf32>
    %cst_138 = arith.constant 3.200000e+01 : f32
    %297 = vector.broadcast %cst_138 : f32 to vector<16x1xf32>
    %298 = arith.divf %296, %297 : vector<16x1xf32>
    %299 = vector.broadcast %291 : vector<16x1xf32> to vector<16x32xf32>
    %300 = arith.subf %283, %299 : vector<16x32xf32>
    %cst_139 = arith.constant 9.99999996E-13 : f32
    %301 = vector.broadcast %cst_139 : f32 to vector<16x1xf32>
    %302 = arith.addf %298, %301 : vector<16x1xf32>
    %303 = math.rsqrt %302 : vector<16x1xf32>
    %304 = vector.broadcast %303 : vector<16x1xf32> to vector<16x32xf32>
    %305 = arith.mulf %300, %304 : vector<16x32xf32>
    %306 = vector.broadcast %285 : vector<1x32xf32> to vector<16x32xf32>
    %307 = arith.mulf %305, %306 : vector<16x32xf32>
    %308 = vector.broadcast %287 : vector<1x32xf32> to vector<16x32xf32>
    %309 = arith.addf %307, %308 : vector<16x32xf32>
    %c1_140 = arith.constant 1 : index
    %c0_141 = arith.constant 0 : index
    %c0_142 = arith.constant 0 : index
    %310 = vector.load %arg12[%c1_140, %c0_141, %c0_142] : memref<2x32x64xf32, #tpu.memory_space<vmem>>, vector<1x32x64xf32>
    %311 = vector.shape_cast %310 : vector<1x32x64xf32> to vector<32x64xf32>
    %cst_143 = arith.constant dense<0.000000e+00> : vector<16x64xf32>
    %312 = tpu.matmul %309, %311, %cst_143 {dimension_numbers = #tpu.dot_dimension_numbers<[1], [0], [0], [1], [0, 0, 1, 1], [], []>} : vector<16x32xf32>, vector<32x64xf32>, vector<16x64xf32> -> vector<16x64xf32>
    %c1_144 = arith.constant 1 : index
    %c0_145 = arith.constant 0 : index
    %c0_146 = arith.constant 0 : index
    %313 = vector.load %arg13[%c1_144, %c0_145, %c0_146] : memref<2x1x64xf32, #tpu.memory_space<vmem>>, vector<1x1x64xf32>
    %314 = vector.shape_cast %313 : vector<1x1x64xf32> to vector<1x64xf32>
    %315 = vector.broadcast %314 : vector<1x64xf32> to vector<16x64xf32>
    %316 = arith.addf %312, %315 : vector<16x64xf32>
    %317 = arith.mulf %316, %316 : vector<16x64xf32>
    %318 = arith.mulf %316, %317 : vector<16x64xf32>
    %cst_147 = arith.constant 4.471500e-02 : f32
    %319 = vector.broadcast %cst_147 : f32 to vector<16x64xf32>
    %320 = arith.mulf %319, %318 : vector<16x64xf32>
    %321 = arith.addf %316, %320 : vector<16x64xf32>
    %cst_148 = arith.constant 0.797884583 : f32
    %322 = vector.broadcast %cst_148 : f32 to vector<16x64xf32>
    %323 = arith.mulf %322, %321 : vector<16x64xf32>
    %324 = math.tanh %323 : vector<16x64xf32>
    %cst_149 = arith.constant 1.000000e+00 : f32
    %325 = vector.broadcast %cst_149 : f32 to vector<16x64xf32>
    %326 = arith.addf %325, %324 : vector<16x64xf32>
    %cst_150 = arith.constant 5.000000e-01 : f32
    %327 = vector.broadcast %cst_150 : f32 to vector<16x64xf32>
    %328 = arith.mulf %327, %326 : vector<16x64xf32>
    %329 = arith.mulf %316, %328 : vector<16x64xf32>
    %c1_151 = arith.constant 1 : index
    %c0_152 = arith.constant 0 : index
    %c0_153 = arith.constant 0 : index
    %330 = vector.load %arg14[%c1_151, %c0_152, %c0_153] : memref<2x64x32xf32, #tpu.memory_space<vmem>>, vector<1x64x32xf32>
    %331 = vector.shape_cast %330 : vector<1x64x32xf32> to vector<64x32xf32>
    %cst_154 = arith.constant dense<0.000000e+00> : vector<16x32xf32>
    %332 = tpu.matmul %329, %331, %cst_154 {dimension_numbers = #tpu.dot_dimension_numbers<[1], [0], [0], [1], [0, 0, 1, 1], [], []>} : vector<16x64xf32>, vector<64x32xf32>, vector<16x32xf32> -> vector<16x32xf32>
    %c1_155 = arith.constant 1 : index
    %c0_156 = arith.constant 0 : index
    %c0_157 = arith.constant 0 : index
    %333 = vector.load %arg15[%c1_155, %c0_156, %c0_157] : memref<2x1x32xf32, #tpu.memory_space<vmem>>, vector<1x1x32xf32>
    %334 = vector.shape_cast %333 : vector<1x1x32xf32> to vector<1x32xf32>
    %335 = vector.broadcast %334 : vector<1x32xf32> to vector<16x32xf32>
    %336 = arith.addf %332, %335 : vector<16x32xf32>
    %337 = arith.addf %309, %336 : vector<16x32xf32>
    %c1_158 = arith.constant 1 : index
    %c0_159 = arith.constant 0 : index
    %c0_160 = arith.constant 0 : index
    %338 = vector.load %arg16[%c1_158, %c0_159, %c0_160] : memref<2x1x32xf32, #tpu.memory_space<vmem>>, vector<1x1x32xf32>
    %339 = vector.shape_cast %338 : vector<1x1x32xf32> to vector<1x32xf32>
    %c1_161 = arith.constant 1 : index
    %c0_162 = arith.constant 0 : index
    %c0_163 = arith.constant 0 : index
    %340 = vector.load %arg17[%c1_161, %c0_162, %c0_163] : memref<2x1x32xf32, #tpu.memory_space<vmem>>, vector<1x1x32xf32>
    %341 = vector.shape_cast %340 : vector<1x1x32xf32> to vector<1x32xf32>
    %cst_164 = arith.constant dense<0.000000e+00> : vector<16xf32>
    %342 = vector.multi_reduction <add>, %337, %cst_164 [1] : vector<16x32xf32> to vector<16xf32>
    %343 = vector.shape_cast %342 : vector<16xf32> to vector<16x1xf32>
    %cst_165 = arith.constant 3.200000e+01 : f32
    %344 = vector.broadcast %cst_165 : f32 to vector<16x1xf32>
    %345 = arith.divf %343, %344 : vector<16x1xf32>
    %346 = vector.broadcast %345 : vector<16x1xf32> to vector<16x32xf32>
    %347 = arith.subf %337, %346 : vector<16x32xf32>
    %348 = arith.mulf %347, %347 : vector<16x32xf32>
    %cst_166 = arith.constant dense<0.000000e+00> : vector<16xf32>
    %349 = vector.multi_reduction <add>, %348, %cst_166 [1] : vector<16x32xf32> to vector<16xf32>
    %350 = vector.shape_cast %349 : vector<16xf32> to vector<16x1xf32>
    %cst_167 = arith.constant 3.200000e+01 : f32
    %351 = vector.broadcast %cst_167 : f32 to vector<16x1xf32>
    %352 = arith.divf %350, %351 : vector<16x1xf32>
    %353 = vector.broadcast %345 : vector<16x1xf32> to vector<16x32xf32>
    %354 = arith.subf %337, %353 : vector<16x32xf32>
    %cst_168 = arith.constant 9.99999996E-13 : f32
    %355 = vector.broadcast %cst_168 : f32 to vector<16x1xf32>
    %356 = arith.addf %352, %355 : vector<16x1xf32>
    %357 = math.rsqrt %356 : vector<16x1xf32>
    %358 = vector.broadcast %357 : vector<16x1xf32> to vector<16x32xf32>
    %359 = arith.mulf %354, %358 : vector<16x32xf32>
    %360 = vector.broadcast %339 : vector<1x32xf32> to vector<16x32xf32>
    %361 = arith.mulf %359, %360 : vector<16x32xf32>
    %362 = vector.broadcast %341 : vector<1x32xf32> to vector<16x32xf32>
    %363 = arith.addf %361, %362 : vector<16x32xf32>
    %c0_169 = arith.constant 0 : index
    %c0_170 = arith.constant 0 : index
    %364 = vector.load %arg18[%c0_169, %c0_170] : memref<32x2xf32, #tpu.memory_space<vmem>>, vector<32x2xf32>
    %cst_171 = arith.constant dense<0.000000e+00> : vector<16x2xf32>
    %365 = tpu.matmul %363, %364, %cst_171 {dimension_numbers = #tpu.dot_dimension_numbers<[1], [0], [0], [1], [0, 0, 1, 1], [], []>} : vector<16x32xf32>, vector<32x2xf32>, vector<16x2xf32> -> vector<16x2xf32>
    %c0_172 = arith.constant 0 : index
    %c0_173 = arith.constant 0 : index
    %366 = vector.load %arg19[%c0_172, %c0_173] : memref<1x2xf32, #tpu.memory_space<vmem>>, vector<1x2xf32>
    %367 = vector.broadcast %366 : vector<1x2xf32> to vector<16x2xf32>
    %368 = arith.addf %365, %367 : vector<16x2xf32>
    %c0_174 = arith.constant 0 : index
    %c0_175 = arith.constant 0 : index
    %369 = vector.load %arg20[%c0_174, %c0_175] : memref<16x2xf32, #tpu.memory_space<vmem>>, vector<16x2xf32>
    tpu.vector_store %arg20[%c0_174, %c0_175], %368 {strides = array<i32>} : memref<16x2xf32, #tpu.memory_space<vmem>>, vector<16x2xf32>,
    %c0_176 = arith.constant 0 : index
    %c0_177 = arith.constant 0 : index
    %370 = vector.load %arg3[%c0_176, %c0_177] : memref<16x1xi32, #tpu.memory_space<vmem>>, vector<16x1xi32>
    %cst_178 = arith.constant dense<0xFF800000> : vector<16xf32>
    %371 = vector.multi_reduction <maximumf>, %368, %cst_178 [1] : vector<16x2xf32> to vector<16xf32>
    %372 = vector.shape_cast %371 : vector<16xf32> to vector<16x1xf32>
    %373 = vector.broadcast %372 : vector<16x1xf32> to vector<16x2xf32>
    %374 = arith.subf %368, %373 : vector<16x2xf32>
    %375 = math.exp %374 : vector<16x2xf32>
    %cst_179 = arith.constant dense<0.000000e+00> : vector<16xf32>
    %376 = vector.multi_reduction <add>, %375, %cst_179 [1] : vector<16x2xf32> to vector<16xf32>
    %377 = vector.shape_cast %376 : vector<16xf32> to vector<16x1xf32>
    %378 = math.log %377 : vector<16x1xf32>
    %379 = arith.addf %372, %378 : vector<16x1xf32>
    %380 = tpu.iota {dimensions = array<i32: 1>} : vector<16x2xi32>
    %381 = vector.broadcast %370 : vector<16x1xi32> to vector<16x2xi32>
    %382 = arith.cmpi eq, %381, %380 : vector<16x2xi32>
    %383 = arith.extui %382 : vector<16x2xi1> to vector<16x2xi32>
    %384 = arith.sitofp %383 : vector<16x2xi32> to vector<16x2xf32>
    %385 = arith.mulf %368, %384 : vector<16x2xf32>
    %cst_180 = arith.constant dense<0.000000e+00> : vector<16xf32>
    %386 = vector.multi_reduction <add>, %385, %cst_180 [1] : vector<16x2xf32> to vector<16xf32>
    %387 = vector.shape_cast %386 : vector<16xf32> to vector<16x1xf32>
    %388 = arith.subf %379, %387 : vector<16x1xf32>
    %389 = vector.shape_cast %388 : vector<16x1xf32> to vector<1x16x1xf32>
    %cst_181 = arith.constant dense<0.000000e+00> : vector<1xf32>
    %390 = vector.multi_reduction <add>, %389, %cst_181 [1, 2] : vector<1x16x1xf32> to vector<1xf32>
    %391 = vector.shape_cast %390 : vector<1xf32> to vector<1x1x1xf32>
    %392 = vector.extract %391[0, 0, 0] : f32 from vector<1x1x1xf32>
    %393 = vector.broadcast %392 : f32 to vector<1x1xf32>
    %cst_182 = arith.constant 1.600000e+01 : f32
    %394 = vector.broadcast %cst_182 : f32 to vector<1x1xf32>
    %395 = arith.divf %393, %394 : vector<1x1xf32>
    %c0_183 = arith.constant 0 : index
    %c0_184 = arith.constant 0 : index
    %396 = vector.load %arg21[%c0_183, %c0_184] : memref<1x1xf32, #tpu.memory_space<vmem>>, vector<1x1xf32>
    tpu.vector_store %arg21[%c0_183, %c0_184], %395 {strides = array<i32>} : memref<1x1xf32, #tpu.memory_space<vmem>>, vector<1x1xf32>,
    return
  }
  func.func @transform_0(%arg0: i32) -> (i32, i32) {
    %c0_i32 = arith.constant 0 : i32
    %c0_i32_0 = arith.constant 0 : i32
    %c0_i32_1 = arith.constant 0 : i32
    return %c0_i32, %c0_i32_0 : i32, i32
  }
  func.func @transform_1(%arg0: i32) -> (i32, i32) {
    %c0_i32 = arith.constant 0 : i32
    %c0_i32_0 = arith.constant 0 : i32
    %c0_i32_1 = arith.constant 0 : i32
    return %c0_i32, %c0_i32_0 : i32, i32
  }
  func.func @transform_2(%arg0: i32) -> (i32, i32) {
    %c0_i32 = arith.constant 0 : i32
    %c0_i32_0 = arith.constant 0 : i32
    %c0_i32_1 = arith.constant 0 : i32
    return %c0_i32, %c0_i32_0 : i32, i32
  }
  func.func @transform_3(%arg0: i32) -> (i32, i32) {
    %c0_i32 = arith.constant 0 : i32
    %c0_i32_0 = arith.constant 0 : i32
    %c0_i32_1 = arith.constant 0 : i32
    return %c0_i32, %c0_i32_0 : i32, i32
  }
  func.func @transform_4(%arg0: i32) -> (i32, i32) {
    %c0_i32 = arith.constant 0 : i32
    %c0_i32_0 = arith.constant 0 : i32
    %c0_i32_1 = arith.constant 0 : i32
    return %c0_i32, %c0_i32_0 : i32, i32
  }
  func.func @transform_5(%arg0: i32) -> (i32, i32, i32) {
    %c0_i32 = arith.constant 0 : i32
    %c0_i32_0 = arith.constant 0 : i32
    %c0_i32_1 = arith.constant 0 : i32
    %c0_i32_2 = arith.constant 0 : i32
    return %c0_i32, %c0_i32_0, %c0_i32_1 : i32, i32, i32
  }
  func.func @transform_6(%arg0: i32) -> (i32, i32, i32) {
    %c0_i32 = arith.constant 0 : i32
    %c0_i32_0 = arith.constant 0 : i32
    %c0_i32_1 = arith.constant 0 : i32
    %c0_i32_2 = arith.constant 0 : i32
    return %c0_i32, %c0_i32_0, %c0_i32_1 : i32, i32, i32
  }
  func.func @transform_7(%arg0: i32) -> (i32, i32, i32) {
    %c0_i32 = arith.constant 0 : i32
    %c0_i32_0 = arith.constant 0 : i32
    %c0_i32_1 = arith.constant 0 : i32
    %c0_i32_2 = arith.constant 0 : i32
    return %c0_i32, %c0_i32_0, %c0_i32_1 : i32, i32, i32
  }
  func.func @transform_8(%arg0: i32) -> (i32, i32, i32) {
    %c0_i32 = arith.constant 0 : i32
    %c0_i32_0 = arith.constant 0 : i32
    %c0_i32_1 = arith.constant 0 : i32
    %c0_i32_2 = arith.constant 0 : i32
    return %c0_i32, %c0_i32_0, %c0_i32_1 : i32, i32, i32
  }
  func.func @transform_9(%arg0: i32) -> (i32, i32, i32) {
    %c0_i32 = arith.constant 0 : i32
    %c0_i32_0 = arith.constant 0 : i32
    %c0_i32_1 = arith.constant 0 : i32
    %c0_i32_2 = arith.constant 0 : i32
    return %c0_i32, %c0_i32_0, %c0_i32_1 : i32, i32, i32
  }
  func.func @transform_10(%arg0: i32) -> (i32, i32, i32) {
    %c0_i32 = arith.constant 0 : i32
    %c0_i32_0 = arith.constant 0 : i32
    %c0_i32_1 = arith.constant 0 : i32
    %c0_i32_2 = arith.constant 0 : i32
    return %c0_i32, %c0_i32_0, %c0_i32_1 : i32, i32, i32
  }
  func.func @transform_11(%arg0: i32) -> (i32, i32, i32) {
    %c0_i32 = arith.constant 0 : i32
    %c0_i32_0 = arith.constant 0 : i32
    %c0_i32_1 = arith.constant 0 : i32
    %c0_i32_2 = arith.constant 0 : i32
    return %c0_i32, %c0_i32_0, %c0_i32_1 : i32, i32, i32
  }
  func.func @transform_12(%arg0: i32) -> (i32, i32, i32) {
    %c0_i32 = arith.constant 0 : i32
    %c0_i32_0 = arith.constant 0 : i32
    %c0_i32_1 = arith.constant 0 : i32
    %c0_i32_2 = arith.constant 0 : i32
    return %c0_i32, %c0_i32_0, %c0_i32_1 : i32, i32, i32
  }
  func.func @transform_13(%arg0: i32) -> (i32, i32, i32) {
    %c0_i32 = arith.constant 0 : i32
    %c0_i32_0 = arith.constant 0 : i32
    %c0_i32_1 = arith.constant 0 : i32
    %c0_i32_2 = arith.constant 0 : i32
    return %c0_i32, %c0_i32_0, %c0_i32_1 : i32, i32, i32
  }
  func.func @transform_14(%arg0: i32) -> (i32, i32, i32) {
    %c0_i32 = arith.constant 0 : i32
    %c0_i32_0 = arith.constant 0 : i32
    %c0_i32_1 = arith.constant 0 : i32
    %c0_i32_2 = arith.constant 0 : i32
    return %c0_i32, %c0_i32_0, %c0_i32_1 : i32, i32, i32
  }
  func.func @transform_15(%arg0: i32) -> (i32, i32, i32) {
    %c0_i32 = arith.constant 0 : i32
    %c0_i32_0 = arith.constant 0 : i32
    %c0_i32_1 = arith.constant 0 : i32
    %c0_i32_2 = arith.constant 0 : i32
    return %c0_i32, %c0_i32_0, %c0_i32_1 : i32, i32, i32
  }
  func.func @transform_16(%arg0: i32) -> (i32, i32, i32) {
    %c0_i32 = arith.constant 0 : i32
    %c0_i32_0 = arith.constant 0 : i32
    %c0_i32_1 = arith.constant 0 : i32
    %c0_i32_2 = arith.constant 0 : i32
    return %c0_i32, %c0_i32_0, %c0_i32_1 : i32, i32, i32
  }
  func.func @transform_17(%arg0: i32) -> (i32, i32) {
    %c0_i32 = arith.constant 0 : i32
    %c0_i32_0 = arith.constant 0 : i32
    %c0_i32_1 = arith.constant 0 : i32
    return %c0_i32, %c0_i32_0 : i32, i32
  }
  func.func @transform_18(%arg0: i32) -> (i32, i32) {
    %c0_i32 = arith.constant 0 : i32
    %c0_i32_0 = arith.constant 0 : i32
    %c0_i32_1 = arith.constant 0 : i32
    return %c0_i32, %c0_i32_0 : i32, i32
  }
  func.func @transform_19(%arg0: i32) -> (i32, i32) {
    %c0_i32 = arith.constant 0 : i32
    %c0_i32_0 = arith.constant 0 : i32
    %c0_i32_1 = arith.constant 0 : i32
    return %c0_i32, %c0_i32_0 : i32, i32
  }
  func.func @transform_20(%arg0: i32) -> (i32, i32) {
    %c0_i32 = arith.constant 0 : i32
    %c0_i32_0 = arith.constant 0 : i32
    %c0_i32_1 = arith.constant 0 : i32
    return %c0_i32, %c0_i32_0 : i32, i32
  }
}

</mosaic_0001>

<bundles_post_ra>
// kernel: tpu_custom_call.1
= control target key start
LH: loop header
LB: loop body
LE: loop exit
PB: predicated region body
PF: predicated region fallthrough
CT: control target
= control target key end

     0   :  { %s4695_s0 = inlined_call_operand.vmem [shape: f32[16,32], index: 0, kind: input, shape index: {}]   ;;  %s4696_s1 = inlined_call_operand.vmem [shape: f32[16,16], index: 1, kind: input, shape index: {}]   ;;  %s4697_s2 = inlined_call_operand.vmem [shape: s32[16,1], index: 2, kind: input, shape index: {}]   ;;  %s4698_s3 = inlined_call_operand.hbm [shape: f32[1,32], index: 3, kind: input, shape index: {}]   ;;  %s4699_s4 = inlined_call_operand.hbm [shape: f32[1,32], index: 4, kind: input, shape index: {}]   ;;  %s4700_s5 = inlined_call_operand.vmem [shape: f32[2,32,96], index: 5, kind: input, shape index: {}]   ;;  %s4701_s6 = inlined_call_operand.vmem [shape: f32[2,1,96], index: 6, kind: input, shape index: {}]   ;;  %s4702_s7 = inlined_call_operand.vmem [shape: f32[2,32,32], index: 7, kind: input, shape index: {}]   ;;  %s4703_s8 = inlined_call_operand.vmem [shape: f32[2,1,32], index: 8, kind: input, shape index: {}]   ;;  %s4704_s9 = inlined_call_operand.hbm [shape: f32[2,1,32], index: 9, kind: input, shape index: {}]   ;;  %s4705_s10 = inlined_call_operand.hbm [shape: f32[2,1,32], index: 10, kind: input, shape index: {}]   ;;  %s4706_s11 = inlined_call_operand.vmem [shape: f32[2,32,64], index: 11, kind: input, shape index: {}]   ;;  %s4707_s12 = inlined_call_operand.hbm [shape: f32[2,1,64], index: 12, kind: input, shape index: {}]   ;;  %s4708_s13 = inlined_call_operand.vmem [shape: f32[2,64,32], index: 13, kind: input, shape index: {}]   ;;  %s4709_s14 = inlined_call_operand.vmem [shape: f32[2,1,32], index: 14, kind: input, shape index: {}]   ;;  %s4710_s15 = inlined_call_operand.vmem [shape: f32[2,1,32], index: 15, kind: input, shape index: {}]   ;;  %s4711_s16 = inlined_call_operand.vmem [shape: f32[2,1,32], index: 16, kind: input, shape index: {}]   ;;  %s4712_s17 = inlined_call_operand.vmem [shape: f32[32,2], index: 17, kind: input, shape index: {}]   ;;  %s4713_s18 = inlined_call_operand.vmem [shape: f32[1,2], index: 18, kind: input, shape index: {}]   ;;  %s4714_s19 = inlined_call_operand.vmem [shape: f32[16,2], index: 19, kind: output, shape index: {0}]   ;;  %s4715_s20 = inlined_call_operand.hbm [shape: f32[1,1], index: 20, kind: output, shape index: {1}]  }
   0x1   :  { %4729 = sst [smem:[#allocation17_spill]] %s4695_s0 }
   0x2   :  { %4730 = sst [smem:[#allocation18_spill]] %s4696_s1 }
   0x3   :  { %4731 = sst [smem:[#allocation19_spill]] %s4697_s2 }
   0x4   :  { %4732 = sst [smem:[#allocation20_spill]] %s4698_s3 }
   0x5   :  { %4733 = sst [smem:[#allocation21_spill]] %s4699_s4 }
   0x6   :  { %4734 = sst [smem:[#allocation22_spill]] %s4715_s20 }
   0x7   :  { %26 = vsyncpa [#allocation4], 0 }
   0x8   :  { %27 = vsyncpa [#allocation7], 0 }
   0x9   :  { %28 = vsyncpa [#allocation10], 0 }
   0xa   :  { %29 = vsyncpa [#allocation5], 0  ;;  %s3999_s1 = smov [#allocation6]   ;;  %s4735_s2 = sld [smem:[#allocation21_spill]] }
   0xb   :  { %s52_s22 = sshll.u32 %s3999_s1, 4  ;;  %s53_s22 = int_to_ptr.vmem [resolvable:$true] %s52_s22 }
  0x10   :  { %s3859_s25 = scalar_lea.hbm %s4735_s2, 16 }
  0x11   :  { %p3860_p0 = scmp.ne.s32.totalorder %s4735_s2, %s3859_s25  ;;  %p3863_p1 = scmp.lt.u32.totalorder %s3859_s25, %s4735_s2 }
  0x13   :  { %p3865_p2 = pnand %p3863_p1, %p3860_p0 }
  0x15   :  { %3868 = shalt.err (!%p3865_p2)
}
  0x16   :  { %s3869_s4 = scalar_lea.vmem %s53_s22, 16  ;;  %s3873_s29 = scalar_lea.vmem %s53_s22, 32 }
  0x17   :  { %p3870_p3 = scmp.ne.s32.totalorder %s53_s22, %s3869_s4  ;;  %p3874_p4 = scmp.lt.s32.totalorder %s53_s22, %s53_s22 }
  0x18   :  { %p3875_p5 = scmp.lt.s32.totalorder %s3873_s29, %s3869_s4 }
  0x1a   :  { %p3876_p6 = por %p3875_p5, %p3874_p4 }
  0x1c   :  { %p3877_p7 = pnand %p3876_p6, %p3870_p3 }
  0x1e   :  { %3880 = shalt.err (!%p3877_p7)
}
  0x1f   :  { %55 = dma.hbm_to_vmem [thread:$0]  %s4735_s2, 16, %s53_s22, [#allocation7]  }
  0x20   :  { %s4000_s21 = smov [#allocation9]   ;;  %s4001_s23 = smov [#allocation3]  }
  0x21   :  { %s81_s1 = sshll.u32 %s4000_s21, 4  ;;  %s42_s24 = sshll.u32 %s4001_s23, 4  ;;  %s82_s1 = int_to_ptr.vmem [resolvable:$true] %s81_s1  ;;  %s43_s24 = int_to_ptr.vmem [resolvable:$true] %s42_s24 }
  0x22   :  { %s3881_s26 = scalar_lea.hbm %s4705_s10, 32 }
  0x23   :  { %p3882_p8 = scmp.ne.s32.totalorder %s4705_s10, %s3881_s26  ;;  %p3885_p9 = scmp.lt.u32.totalorder %s3881_s26, %s4705_s10 }
  0x25   :  { %p3887_p10 = pnand %p3885_p9, %p3882_p8 }
  0x27   :  { %3890 = shalt.err (!%p3887_p10)
}
  0x28   :  { %s3891_s22 = scalar_lea.vmem %s82_s1, 32  ;;  %p3896_p12 = scmp.lt.s32.totalorder %s82_s1, %s82_s1 }
  0x29   :  { %p3892_p11 = scmp.ne.s32.totalorder %s82_s1, %s3891_s22  ;;  %p3897_p13 = scmp.lt.s32.totalorder %s3891_s22, %s3891_s22 }
  0x2b   :  { %p3898_p0 = por %p3897_p13, %p3896_p12 }
  0x2d   :  { %p3899_p1 = pnand %p3898_p0, %p3892_p11 }
  0x2f   :  { %3902 = shalt.err (!%p3899_p1)
}
  0x30   :  { %s4722_s2 = smov 16   ;;  %s4003_s30 = smov 1  }
  0x31   :  { %87 = dma.hbm_to_vmem [thread:$0]  %s4705_s10, 32, %s82_s1, [#allocation10], %s4722_s2, %s4722_s2, %s4003_s30  }
  0x32   :  { %s4736_s3 = sld [smem:[#allocation20_spill]] }
  0x38   :  { %s3903_s26 = scalar_lea.hbm %s4736_s3, 16 }
  0x39   :  { %p3904_p2 = scmp.ne.s32.totalorder %s4736_s3, %s3903_s26  ;;  %p3907_p3 = scmp.lt.u32.totalorder %s3903_s26, %s4736_s3 }
  0x3b   :  { %p3909_p4 = pnand %p3907_p3, %p3904_p2 }
  0x3d   :  { %3912 = shalt.err (!%p3909_p4)
}
  0x3e   :  { %s3913_s22 = scalar_lea.vmem %s43_s24, 16  ;;  %s3917_s20 = scalar_lea.vmem %s43_s24, 32 }
  0x3f   :  { %p3914_p5 = scmp.ne.s32.totalorder %s43_s24, %s3913_s22  ;;  %p3918_p6 = scmp.lt.s32.totalorder %s43_s24, %s43_s24 }
  0x40   :  { %p3919_p7 = scmp.lt.s32.totalorder %s3917_s20, %s3913_s22 }
  0x42   :  { %p3920_p8 = por %p3919_p7, %p3918_p6 }
  0x44   :  { %p3921_p9 = pnand %p3920_p8, %p3914_p5 }
  0x46   :  { %3924 = shalt.err (!%p3921_p9)
}
  0x47   :  { %45 = dma.hbm_to_vmem [thread:$0]  %s4736_s3, 16, %s43_s24, [#allocation4]  }
  0x48   :  { %s4004_s0 = smov [#allocation8]   ;;  %s4005_s23 = smov [#allocation11]  }
  0x49   :  { %s69_s21 = sshll.u32 %s4004_s0, 4  ;;  %s95_s25 = sshll.u32 %s4005_s23, 4  ;;  %s70_s21 = int_to_ptr.vmem [resolvable:$true] %s69_s21  ;;  %s96_s25 = int_to_ptr.vmem [resolvable:$true] %s95_s25 }
  0x4a   :  { %s3925_s28 = scalar_lea.hbm %s4704_s9, 32 }
  0x4b   :  { %p3926_p10 = scmp.ne.s32.totalorder %s4704_s9, %s3925_s28  ;;  %p3929_p11 = scmp.lt.u32.totalorder %s3925_s28, %s4704_s9 }
  0x4d   :  { %p3931_p12 = pnand %p3929_p11, %p3926_p10 }
  0x4f   :  { %3934 = shalt.err (!%p3931_p12)
}
  0x50   :  { %s3935_s24 = scalar_lea.vmem %s70_s21, 32  ;;  %p3940_p0 = scmp.lt.s32.totalorder %s70_s21, %s70_s21 }
  0x51   :  { %p3936_p13 = scmp.ne.s32.totalorder %s70_s21, %s3935_s24  ;;  %p3941_p1 = scmp.lt.s32.totalorder %s3935_s24, %s3935_s24 }
  0x53   :  { %p3942_p2 = por %p3941_p1, %p3940_p0 }
  0x55   :  { %p3943_p3 = pnand %p3942_p2, %p3936_p13 }
  0x57   :  { %3946 = shalt.err (!%p3943_p3)
}
  0x58   :  { %75 = dma.hbm_to_vmem [thread:$0]  %s4704_s9, 32, %s70_s21, [#allocation7], %s4722_s2, %s4722_s2, %s4003_s30  }
  0x59   :  { %s3947_s23 = scalar_lea.hbm %s4707_s12, 32 }
  0x5a   :  { %p3948_p4 = scmp.ne.s32.totalorder %s4707_s12, %s3947_s23  ;;  %p3951_p5 = scmp.lt.u32.totalorder %s3947_s23, %s4707_s12 }
  0x5c   :  { %p3953_p6 = pnand %p3951_p5, %p3948_p4 }
  0x5e   :  { %3956 = shalt.err (!%p3953_p6)
}
  0x5f   :  { %s3957_s29 = scalar_lea.vmem %s96_s25, 32  ;;  %p3962_p8 = scmp.lt.s32.totalorder %s96_s25, %s96_s25 }
  0x60   :  { %p3958_p7 = scmp.ne.s32.totalorder %s96_s25, %s3957_s29  ;;  %p3963_p9 = scmp.lt.s32.totalorder %s3957_s29, %s3957_s29 }
  0x62   :  { %p3964_p10 = por %p3963_p9, %p3962_p8 }
  0x64   :  { %p3965_p11 = pnand %p3964_p10, %p3958_p7 }
  0x66   :  { %3968 = shalt.err (!%p3965_p11)
}
  0x67   :  { %101 = dma.hbm_to_vmem [thread:$0]  %s4707_s12, 32, %s96_s25, [#allocation10], %s4722_s2, %s4722_s2, %s4003_s30  }
  0x68   :  { %3991 = dma.done.wait [#allocation4], 16  }
  0x69   :  { %3992 = vsyncadd [#allocation4], 4294967280 }
  0x6a   :  { %3993 = dma.done.wait [#allocation7], 48  }
  0x6b   :  { %3994 = vsyncadd [#allocation7], 4294967248 }
  0x6c   :  { %3995 = dma.done.wait [#allocation10], 64  }
  0x6d   :  { %3996 = vsyncadd [#allocation10], 4294967232  ;;  %vm133_vm0 = vcmask 261120   ;;  %s4737_s24 = sld [smem:[#allocation17_spill]]  ;;  %v179_v14 = vld [vmem:[%s4700_s5] sm:$0xff]  ;;  %v180_v15 = vld [vmem:[%s4700_s5 + $0x8] sm:$0xff] }
  0x6e   :  { %v181_v16 = vld [vmem:[%s4700_s5 + $0x10] sm:$0xff]  ;;  %v3482_v17 = vpack.c.bf16 %v180_v15, %v179_v14  ;;  %v182_v18 = vld [vmem:[%s4700_s5 + $0x18] sm:$0xff]  ;;  %v3019_v36 = vld [vmem:[%s4701_s6] ss:$0 sm:$0xff]  ;;  %vm279_vm1 = vcmask 64512   ;;  %s4006_s29 = smov 96  }
  0x6f   :  { %v3486_v19 = vpack.c.bf16 %v182_v18, %v181_v16  ;;  %v3017_v27 = vld [vmem:[#allocation3] ss:$0 sm:$0xff]  ;;  %v3018_v29 = vld [vmem:[#allocation6] ss:$0 sm:$0xff]  ;;  %s4007_s9 = smov 88   ;;  %s4008_s21 = smov 120   ;;  %vm4247_vm2 = vmpackc.low %vm279_vm1, %vm279_vm1 }
  0x70   :  { %3483 = vmatprep.subr.bf16.mxu0 %v3482_v17  ;;  %vm365_vm3 = vcmask 130048   ;;  %s4009_s12 = smov 64   ;;  %s4010_s30 = smov 56   ;;  %vm685_vm4 = vcmask 130112   ;;  %vm896_vm5 = vcmask 195712   ;;  %vm1107_vm6 = vcmask 261312  }
  0x71   :  { %3485 = vmatpush3.bf16.msra.mxu0 %v3482_v17  ;;  %s4011_s25 = smov 112   ;;  %s4012_s1 = smov 80   ;;  %vm1375_vm7 = vcmask 523264   ;;  %vm2925_vm8 = vcmask 15360   ;;  %vm2978_vm11 = vcmask 7168   ;;  %vm2994_vm12 = vcmask 0  }
  0x72   :  { %3487 = vmatprep.subr.bf16.mxu0 %v3486_v19  ;;  %s4013_s0 = smov 48   ;;  %s4014_s23 = smov 104  }
  0x73   :  { %v129_v0 = vld [vmem:[%s4737_s24] sm:$0xff]  ;;  %v130_v1 = vld [vmem:[%s4737_s24 + $0x8] sm:$0xff]  ;;  %s4740_s24 = sld [smem:[#allocation18_spill]]  ;;  %s4015_s26 = smov 72  }
  0x74   :  { %v134_v2 = vsel %vm133_vm0, %v129_v0, 0.0  ;;  %v137_v3 = vsel %vm133_vm0, %v130_v1, 0.0  ;;  %s4726_s27 = smov 40   ;;  %s4724_s28 = smov 8  }
  0x75   :  { %135 = vadd.xlane.f32.xlu0 %v134_v2  ;;  %3489 = vmatpush3.bf16.msra.mxu0 %v3486_v19  ;;  %s4727_s4 = smov 24   ;;  %s4744_s20 = smov 24  }
  0x79   :  { %138 = vadd.xlane.f32.xlu0 %v137_v3  ;;  %v4260_v49 = vld [vmem:[%s4740_s24] sm:$0xff]  ;;  %v4265_v51 = vld [vmem:[%s4740_s24 + $0x8] sm:$0xff] }
 0x102   :  { %v136_v4 = vpop.xlane.xlu0 %135 }
 0x103   :  { %v141_v5 = vmul.f32 0.03125, %v136_v4 }
 0x105   :  { %v143_v6 = vsub.f32 %v129_v0, %v141_v5 }
 0x106   :  { %v139_v7 = vpop.xlane.xlu0 %138 }
 0x107   :  { %v142_v8 = vmul.f32 0.03125, %v139_v7  ;;  %v145_v9 = vmul.f32 %v143_v6, %v143_v6 }
 0x109   :  { %v144_v10 = vsub.f32 %v130_v1, %v142_v8  ;;  %v147_v11 = vsel %vm133_vm0, %v145_v9, 0.0 }
 0x10a   :  { %148 = vadd.xlane.f32.xlu1 %v147_v11 }
 0x10b   :  { %v146_v12 = vmul.f32 %v144_v10, %v144_v10 }
 0x10d   :  { %v150_v13 = vsel %vm133_vm0, %v146_v12, 0.0 }
 0x10e   :  { %151 = vadd.xlane.f32.xlu1 %v150_v13 }
 0x197   :  { %v149_v20 = vpop.xlane.xlu1 %148 }
 0x198   :  { %v153_v21 = vmul.f32 0.03125, %v149_v20 }
 0x19a   :  { %v155_v22 = vadd.f32 1e-12, %v153_v21 }
 0x19b   :  { %v152_v23 = vpop.xlane.xlu1 %151 }
 0x19c   :  { %3757 = vrsqrt.f32 %v155_v22  ;;  %v154_v24 = vmul.f32 0.03125, %v152_v23 }
 0x19e   :  { %v156_v25 = vadd.f32 1e-12, %v154_v24 }
 0x1a0   :  { %3759 = vrsqrt.f32 %v156_v25 }
 0x1a6   :  { %v3758_v26 = vpop.eup %3757 }
 0x1a7   :  { %v159_v28 = vmul.f32 %v3758_v26, %v143_v6 }
 0x1a9   :  { %v167_v30 = vmul.f32 %v3017_v27, %v159_v28 }
 0x1aa   :  { %v3760_v31 = vpop.eup %3759 }
 0x1ab   :  { %v160_v32 = vmul.f32 %v3760_v31, %v144_v10  ;;  %v4218_v33 = vadd.f32 %v3018_v29, %v167_v30 }
 0x1ad   :  { %v168_v34 = vmul.f32 %v3017_v27, %v160_v32  ;;  %3263 = vmatprep.mubr.msk.f32.mxu0 %vm133_vm0, %v4218_v33 }
 0x1af   :  { %v4222_v35 = vadd.f32 %v3018_v29, %v168_v34 }
 0x1b1   :  { %3264 = vmatmul.mubr.msk.f32.vlgmr.msra.gmra.mrb[0].mxu0 %vm133_vm0, %v4222_v35 }
 0x284   :  { %v3265_v37 = vpop.f32.mrb[0].mxu0 }
 0x285   :  { %v268_v38 = vadd.f32 %v3265_v37, %v3019_v36  ;;  %v262_v39 = vpop.f32.mrb[1].mxu0 }
 0x286   :  { %v263_v40 = vadd.f32 %v3019_v36, %v262_v39 }
 0x287   :  { %v4241_v43 = vmul.f32 0.35355338, %v268_v38 }
 0x288   :  { %v4229_v41 = vpack.i.bf16 %v268_v38, %v263_v40  ;;  %v4231_v42 = vmul.f32 0.35355338, %v263_v40 }
 0x28a   :  { %3676 = vrot.lane.b32.xlu0 %v4229_v41, %s4006_s29  ;;  %3270 = vmatprep.mubr.msk.f32.mxu1 %vm279_vm1, %v4231_v42 }
 0x28e   :  { %3686 = vrot.lane.b32.xlu0 %v4229_v41, %s4007_s9 }
 0x292   :  { %477 = vrot.lane.b32.xlu0 %v4231_v42, %s4008_s21 }
 0x296   :  { %479 = vrot.lane.b32.xlu0 %v4241_v43, %s4008_s21 }
 0x2fc   :  { %v3677_v44 = vpop.permute.xlu0 %3676 }
 0x2fd   :  { %v3679_v45 = vunpack.i.h.bf16 %v3677_v44  ;;  %v3678_v46 = vunpack.i.l.bf16 %v3677_v44 }
 0x2ff   :  { %v3490_v48 = vpack.c.bf16 %v3679_v45, %v3678_v46 }
 0x300   :  { %v3687_v5 = vpop.permute.xlu0 %3686 }
 0x301   :  { %3492 = vmatprep.subr.msk.bf16.mxu1 %vm4247_vm2, %v3490_v48  ;;  %v3689_v7 = vunpack.i.h.bf16 %v3687_v5  ;;  %v3688_v8 = vunpack.i.l.bf16 %v3687_v5 }
 0x302   :  { %3495 = vmatpush3.bf16.xpose.msk.msra.mxu1 %vm4247_vm2, %v3490_v48 }
 0x303   :  { %v3500_v12 = vpack.c.bf16 %v3689_v7, %v3688_v8 }
 0x304   :  { %v478_v17 = vpop.permute.xlu0 %477 }
 0x308   :  { %v480_v18 = vpop.permute.xlu0 %479 }
 0x309   :  { %3271 = vmatmul.mubr.msk.f32.vlgmr.msra.gmra.mrb[0].mxu1 %vm279_vm1, %v4241_v43 }
 0x3dc   :  { %v3272_v50 = vpop.f32.mrb[0].mxu1 }
 0x3dd   :  { %v356_v52 = vpop.f32.mrb[1].mxu1  ;;  %v362_v54 = vadd.f32 %v3272_v50, %v4265_v51 }
 0x3de   :  { %v357_v53 = vadd.f32 %v356_v52, %v4260_v49 }
 0x3df   :  { %v369_v56 = vsel %vm365_vm3, %v362_v54, -inf }
 0x3e0   :  { %v366_v55 = vsel %vm365_vm3, %v357_v53, -inf }
 0x3e1   :  { %367 = vmax.xlane.f32.xlu1 %v366_v55 }
 0x3e5   :  { %370 = vmax.xlane.f32.xlu1 %v369_v56 }
 0x46e   :  { %v368_v57 = vpop.xlane.xlu1 %367 }
 0x46f   :  { %v372_v58 = vsub.f32 %v357_v53, %v368_v57 }
 0x471   :  { %v374_v61 = vmul.f32 1.442695, %v372_v58 }
 0x472   :  { %v371_v59 = vpop.xlane.xlu1 %370 }
 0x473   :  { %v373_v60 = vsub.f32 %v362_v54, %v371_v59 }
 0x475   :  { %v376_v62 = vmul.f32 1.442695, %v373_v60 }
 0x477   :  { %3761 = vpow2.f32 %v376_v62 }
 0x478   :  { %3763 = vpow2.f32 %v374_v61 }
 0x481   :  { %v3762_v63 = vpop.eup %3761 }
 0x482   :  { %v381_v0 = vsel %vm365_vm3, %v3762_v63, 0.0  ;;  %v3764_v1 = vpop.eup %3763 }
 0x483   :  { %382 = vadd.xlane.f32.xlu1 %v381_v0  ;;  %v378_v2 = vsel %vm365_vm3, %v3764_v1, 0.0 }
 0x487   :  { %379 = vadd.xlane.f32.xlu1 %v378_v2 }
 0x498   :  { %3681 = vrot.lane.b32.xlu1 %v4229_v41, %s4009_s12 }
 0x510   :  { %v383_v3 = vpop.xlane.xlu1 %382 }
 0x511   :  { %3765 = vrcp.f32 %v383_v3 }
 0x514   :  { %v380_v4 = vpop.xlane.xlu1 %379 }
 0x515   :  { %3767 = vrcp.f32 %v380_v4 }
 0x518   :  { %v3682_v6 = vpop.permute.xlu1 %3681 }
 0x519   :  { %v3684_v9 = vunpack.i.h.bf16 %v3682_v6  ;;  %v3683_v10 = vunpack.i.l.bf16 %v3682_v6 }
 0x51b   :  { %v3496_v11 = vpack.c.bf16 %v3684_v9, %v3683_v10  ;;  %v3766_v13 = vpop.eup %3765 }
 0x51c   :  { %v387_v16 = vmul.f32 %v3766_v13, %v3762_v63 }
 0x51d   :  { %3497 = vmatprep.subr.bf16.mxu1 %v3496_v11 }
 0x51e   :  { %3499 = vmatpush3.bf16.msra.mxu1 %v3496_v11 }
 0x51f   :  { %v3768_v14 = vpop.eup %3767  ;;  %3502 = vmatprep.subr.msk.bf16.mxu1 %vm4247_vm2, %v3500_v12 }
 0x520   :  { %v386_v15 = vmul.f32 %v3768_v14, %v3764_v1 }
 0x522   :  { %3277 = vmatprep.mubr.msk.f32.mxu1 %vm365_vm3, %v386_v15 }
 0x523   :  { %3278 = vmatmul.mubr.msk.f32.vlgmr.msra.gmra.mrb[2].mxu1 %vm365_vm3, %v387_v16 }
 0x524   :  { %3284 = vmatprep.mubr.msk.f32.mxu1 %vm279_vm1, %v478_v17 }
 0x527   :  { %3505 = vmatpush3.bf16.xpose.msk.msra.mxu1 %vm4247_vm2, %v3500_v12 }
 0x52e   :  { %3285 = vmatmul.mubr.msk.f32.vlgmr.msra.gmra.mrb[4].mxu1 %vm279_vm1, %v480_v18 }
 0x5f6   :  { %v3279_v19 = vpop.f32.mrb[2].mxu1 }
 0x5f7   :  { %476 = vst.msk [vmem:[#allocation2 + $0x8] sm:$0xff] %vm279_vm1, %v3279_v19  ;;  %v466_v20 = vpop.f32.mrb[3].mxu1 }
 0x5f8   :  { %475 = vst.msk [vmem:[#allocation2] sm:$0xff] %vm279_vm1, %v466_v20 }
 0x601   :  { %v3286_v21 = vpop.f32.mrb[4].mxu1 }
 0x602   :  { %v565_v22 = vadd.f32 %v3286_v21, %v4265_v51  ;;  %v559_v23 = vpop.f32.mrb[5].mxu1 }
 0x603   :  { %v560_v24 = vadd.f32 %v559_v23, %v4260_v49 }
 0x604   :  { %v571_v25 = vsel %vm365_vm3, %v565_v22, -inf }
 0x605   :  { %572 = vmax.xlane.f32.xlu0 %v571_v25  ;;  %v568_v26 = vsel %vm365_vm3, %v560_v24, -inf }
 0x606   :  { %569 = vmax.xlane.f32.xlu1 %v568_v26 }
 0x617   :  { %3691 = vrot.lane.b32.xlu1 %v4229_v41, %s4010_s30 }
 0x61b   :  { %688 = vrot.lane.b32.xlu1 %v4231_v42, %s4011_s25 }
 0x61f   :  { %690 = vrot.lane.b32.xlu1 %v4241_v43, %s4011_s25 }
 0x692   :  { %v573_v27 = vpop.xlane.xlu0 %572 }
 0x693   :  { %v575_v28 = vsub.f32 %v565_v22, %v573_v27  ;;  %v570_v29 = vpop.xlane.xlu1 %569 }
 0x694   :  { %v574_v30 = vsub.f32 %v560_v24, %v570_v29 }
 0x695   :  { %v578_v31 = vmul.f32 1.442695, %v575_v28 }
 0x696   :  { %v576_v32 = vmul.f32 1.442695, %v574_v30 }
 0x697   :  { %3769 = vpow2.f32 %v578_v31  ;;  %v3692_v34 = vpop.permute.xlu1 %3691 }
 0x698   :  { %v3694_v36 = vunpack.i.h.bf16 %v3692_v34  ;;  %v3693_v37 = vunpack.i.l.bf16 %v3692_v34  ;;  %3771 = vpow2.f32 %v576_v32 }
 0x69a   :  { %v3506_v38 = vpack.c.bf16 %v3694_v36, %v3693_v37 }
 0x69b   :  { %v689_v59 = vpop.permute.xlu1 %688 }
 0x69c   :  { %3507 = vmatprep.subr.bf16.mxu0 %v3506_v38 }
 0x69d   :  { %3509 = vmatpush3.bf16.msra.mxu0 %v3506_v38 }
 0x69f   :  { %v691_v60 = vpop.permute.xlu1 %690 }
 0x6a1   :  { %v3770_v39 = vpop.eup %3769 }
 0x6a2   :  { %v583_v40 = vsel %vm365_vm3, %v3770_v39, 0.0  ;;  %v3772_v44 = vpop.eup %3771 }
 0x6a3   :  { %584 = vadd.xlane.f32.xlu0 %v583_v40  ;;  %v580_v45 = vsel %vm365_vm3, %v3772_v44, 0.0 }
 0x6a7   :  { %581 = vadd.xlane.f32.xlu0 %v580_v45 }
 0x6bd   :  { %3696 = vrot.lane.b32.xlu0 %v4229_v41, %s4012_s1 }
 0x730   :  { %v585_v46 = vpop.xlane.xlu0 %584 }
 0x731   :  { %3773 = vrcp.f32 %v585_v46 }
 0x734   :  { %v582_v48 = vpop.xlane.xlu0 %581 }
 0x735   :  { %3775 = vrcp.f32 %v582_v48 }
 0x738   :  { %v3697_v50 = vpop.permute.xlu0 %3696 }
 0x739   :  { %v3699_v52 = vunpack.i.h.bf16 %v3697_v50  ;;  %v3698_v53 = vunpack.i.l.bf16 %v3697_v50 }
 0x73b   :  { %v3510_v54 = vpack.c.bf16 %v3699_v52, %v3698_v53  ;;  %v3774_v55 = vpop.eup %3773 }
 0x73c   :  { %v589_v58 = vmul.f32 %v3774_v55, %v3770_v39 }
 0x73d   :  { %3512 = vmatprep.subr.msk.bf16.mxu0 %vm4247_vm2, %v3510_v54 }
 0x73f   :  { %v3776_v56 = vpop.eup %3775 }
 0x740   :  { %v588_v57 = vmul.f32 %v3776_v56, %v3772_v44 }
 0x742   :  { %3291 = vmatprep.mubr.msk.f32.mxu0 %vm365_vm3, %v588_v57 }
 0x743   :  { %3292 = vmatmul.mubr.msk.f32.vlgmr.msra.gmra.mrb[2].mxu0 %vm365_vm3, %v589_v58 }
 0x744   :  { %3515 = vmatpush3.bf16.xpose.msk.msra.mxu0 %vm4247_vm2, %v3510_v54  ;;  %3298 = vmatprep.mubr.msk.f32.mxu0 %vm279_vm1, %v689_v59 }
 0x74b   :  { %3299 = vmatmul.mubr.msk.f32.vlgmr.msra.gmra.mrb[4].mxu0 %vm279_vm1, %v691_v60 }
 0x816   :  { %v4307_v61 = vpop.f32.mrb[2].mxu0 }
 0x817   :  { %v4309_v62 = vpop.f32.mrb[3].mxu0 }
 0x81e   :  { %v3300_v63 = vpop.f32.mrb[4].mxu0 }
 0x81f   :  { %v776_v0 = vadd.f32 %v3300_v63, %v4265_v51  ;;  %v770_v1 = vpop.f32.mrb[5].mxu0 }
 0x820   :  { %v771_v2 = vadd.f32 %v770_v1, %v4260_v49 }
 0x821   :  { %v782_v3 = vsel %vm365_vm3, %v776_v0, -inf }
 0x822   :  { %783 = vmax.xlane.f32.xlu0 %v782_v3  ;;  %v779_v4 = vsel %vm365_vm3, %v771_v2, -inf }
 0x823   :  { %780 = vmax.xlane.f32.xlu1 %v779_v4 }
 0x834   :  { %3701 = vrot.lane.b32.xlu1 %v4229_v41, %s4013_s0 }
 0x838   :  { %899 = vrot.lane.b32.xlu1 %v4231_v42, %s4014_s23 }
 0x83c   :  { %901 = vrot.lane.b32.xlu1 %v4241_v43, %s4014_s23 }
 0x8af   :  { %v784_v5 = vpop.xlane.xlu0 %783 }
 0x8b0   :  { %v786_v6 = vsub.f32 %v776_v0, %v784_v5  ;;  %v781_v7 = vpop.xlane.xlu1 %780  ;;  %v1113_v5 = vld [vmem:[%s4702_s7 + $0x8] sm:$0xff] }
 0x8b1   :  { %v785_v8 = vsub.f32 %v771_v2, %v781_v7  ;;  %v1114_v7 = vld [vmem:[%s4702_s7 + $0x10] sm:$0xff] }
 0x8b2   :  { %v789_v9 = vmul.f32 1.442695, %v786_v6 }
 0x8b3   :  { %v787_v10 = vmul.f32 1.442695, %v785_v8  ;;  %v1115_v8 = vld [vmem:[%s4702_s7 + $0x18] sm:$0xff] }
 0x8b4   :  { %3777 = vpow2.f32 %v789_v9  ;;  %v3702_v11 = vpop.permute.xlu1 %3701  ;;  %v3534_v9 = vpack.c.bf16 %v1115_v8, %v1114_v7  ;;  %v3051_v8 = vld [vmem:[#allocation11] ss:$0 sm:$0xff] }
 0x8b5   :  { %v3704_v12 = vunpack.i.h.bf16 %v3702_v11  ;;  %v3703_v13 = vunpack.i.l.bf16 %v3702_v11  ;;  %3779 = vpow2.f32 %v787_v10 }
 0x8b7   :  { %v3516_v14 = vpack.c.bf16 %v3704_v12, %v3703_v13 }
 0x8b8   :  { %v900_v27 = vpop.permute.xlu1 %899 }
 0x8b9   :  { %3517 = vmatprep.subr.bf16.mxu1 %v3516_v14 }
 0x8ba   :  { %3519 = vmatpush3.bf16.msra.mxu1 %v3516_v14 }
 0x8bc   :  { %v902_v28 = vpop.permute.xlu1 %901 }
 0x8be   :  { %v3778_v15 = vpop.eup %3777 }
 0x8bf   :  { %v794_v42 = vsel %vm365_vm3, %v3778_v15, 0.0  ;;  %v3780_v16 = vpop.eup %3779 }
 0x8c0   :  { %795 = vadd.xlane.f32.xlu0 %v794_v42  ;;  %v791_v43 = vsel %vm365_vm3, %v3780_v16, 0.0  ;;  %v3046_v42 = vld [vmem:[%s4703_s8] ss:$0 sm:$0xff] }
 0x8c4   :  { %792 = vadd.xlane.f32.xlu0 %v791_v43 }
 0x8da   :  { %3706 = vrot.lane.b32.xlu0 %v4229_v41, %s4015_s26 }
 0x94d   :  { %v796_v17 = vpop.xlane.xlu0 %795 }
 0x94e   :  { %3781 = vrcp.f32 %v796_v17 }
 0x951   :  { %v793_v18 = vpop.xlane.xlu0 %792 }
 0x952   :  { %3783 = vrcp.f32 %v793_v18 }
 0x955   :  { %v3707_v19 = vpop.permute.xlu0 %3706 }
 0x956   :  { %v3709_v20 = vunpack.i.h.bf16 %v3707_v19  ;;  %v3708_v21 = vunpack.i.l.bf16 %v3707_v19 }
 0x958   :  { %v3520_v22 = vpack.c.bf16 %v3709_v20, %v3708_v21  ;;  %v3782_v23 = vpop.eup %3781 }
 0x959   :  { %v800_v26 = vmul.f32 %v3782_v23, %v3778_v15 }
 0x95a   :  { %3522 = vmatprep.subr.msk.bf16.mxu1 %vm4247_vm2, %v3520_v22 }
 0x95c   :  { %v3784_v24 = vpop.eup %3783 }
 0x95d   :  { %v799_v25 = vmul.f32 %v3784_v24, %v3780_v16 }
 0x95f   :  { %3305 = vmatprep.mubr.msk.f32.mxu1 %vm365_vm3, %v799_v25 }
 0x960   :  { %3306 = vmatmul.mubr.msk.f32.vlgmr.msra.gmra.mrb[6].mxu1 %vm365_vm3, %v800_v26 }
 0x961   :  { %3525 = vmatpush3.bf16.xpose.msk.msra.mxu1 %vm4247_vm2, %v3520_v22  ;;  %3312 = vmatprep.mubr.msk.f32.mxu1 %vm279_vm1, %v900_v27 }
 0x968   :  { %3313 = vmatmul.mubr.msk.f32.vlgmr.msra.gmra.mrb[8].mxu1 %vm279_vm1, %v902_v28 }
 0xa33   :  { %v3307_v29 = vpop.f32.mrb[6].mxu1 }
 0xa34   :  { %v879_v30 = vpop.f32.mrb[7].mxu1 }
 0xa3b   :  { %v3314_v31 = vpop.f32.mrb[8].mxu1 }
 0xa3c   :  { %v987_v32 = vadd.f32 %v3314_v31, %v4265_v51  ;;  %v981_v34 = vpop.f32.mrb[9].mxu1 }
 0xa3d   :  { %v982_v36 = vadd.f32 %v981_v34, %v4260_v49 }
 0xa3e   :  { %v993_v37 = vsel %vm365_vm3, %v987_v32, -inf }
 0xa3f   :  { %994 = vmax.xlane.f32.xlu0 %v993_v37  ;;  %v990_v38 = vsel %vm365_vm3, %v982_v36, -inf  ;;  %v1253_v37 = vld [vmem:[%s4706_s11 + $0x18] sm:$0xff] }
 0xa40   :  { %991 = vmax.xlane.f32.xlu1 %v990_v38 }
 0xa51   :  { %3711 = vrot.lane.b32.xlu1 %v4229_v41, %s4726_s27 }
 0xa55   :  { %681 = vrot.lane.b32.xlu1 %v4307_v61, %s4724_s28 }
 0xa59   :  { %890 = vrot.lane.b32.xlu1 %v879_v30, %s4722_s2 }
 0xa5d   :  { %892 = vrot.lane.b32.xlu1 %v3307_v29, %s4722_s2 }
 0xacc   :  { %v995_v39 = vpop.xlane.xlu0 %994 }
 0xacd   :  { %v997_v40 = vsub.f32 %v987_v32, %v995_v39  ;;  %v992_v44 = vpop.xlane.xlu1 %991  ;;  %v1251_v32 = vld [vmem:[%s4706_s11 + $0x8] sm:$0xff] }
 0xace   :  { %v996_v45 = vsub.f32 %v982_v36, %v992_v44  ;;  %v1252_v36 = vld [vmem:[%s4706_s11 + $0x10] sm:$0xff] }
 0xacf   :  { %v1000_v46 = vmul.f32 1.442695, %v997_v40  ;;  %v3542_v38 = vpack.c.bf16 %v1253_v37, %v1252_v36 }
 0xad0   :  { %v998_v48 = vmul.f32 1.442695, %v996_v45 }
 0xad1   :  { %v3712_v50 = vpop.permute.xlu1 %3711 }
 0xad2   :  { %3785 = vpow2.f32 %v998_v48  ;;  %v3714_v52 = vunpack.i.h.bf16 %v3712_v50  ;;  %v3713_v53 = vunpack.i.l.bf16 %v3712_v50 }
 0xad3   :  { %3787 = vpow2.f32 %v1000_v46 }
 0xad4   :  { %v3526_v41 = vpack.c.bf16 %v3714_v52, %v3713_v53  ;;  %v3049_v52 = vld [vmem:[#allocation8] ss:$0 sm:$0xff] }
 0xad5   :  { %v682_v54 = vpop.permute.xlu1 %681 }
 0xad6   :  { %687 = vst.msk [vmem:[#allocation2 + $0x8] sm:$0xff] %vm685_vm4, %v682_v54  ;;  %3527 = vmatprep.subr.bf16.mxu0 %v3526_v41 }
 0xad7   :  { %3529 = vmatpush3.bf16.msra.mxu0 %v3526_v41  ;;  %v3050_v41 = vld [vmem:[#allocation9] ss:$0 sm:$0xff] }
 0xad9   :  { %v891_v55 = vpop.permute.xlu1 %890 }
 0xadc   :  { %v3786_v56 = vpop.eup %3785 }
 0xadd   :  { %v893_v57 = vpop.permute.xlu1 %892  ;;  %v1002_v58 = vsel %vm365_vm3, %v3786_v56, 0.0  ;;  %v3788_v59 = vpop.eup %3787 }
 0xade   :  { %898 = vst.msk [vmem:[#allocation2 + $0x8] sm:$0xff] %vm896_vm5, %v893_v57  ;;  %1003 = vadd.xlane.f32.xlu0 %v1002_v58  ;;  %v1005_v60 = vsel %vm365_vm3, %v3788_v59, 0.0 }
 0xae2   :  { %1006 = vadd.xlane.f32.xlu0 %v1005_v60  ;;  %v1360_v60 = vld [vmem:[%s4708_s13] sm:$0xff] }
 0xaf8   :  { %679 = vrot.lane.b32.xlu0 %v4309_v62, %s4724_s28  ;;  %v1112_v62 = vld [vmem:[%s4702_s7] sm:$0xff] }
 0xaf9   :  { %v3530_v6 = vpack.c.bf16 %v1113_v5, %v1112_v62  ;;  %v1366_v5 = vld [vmem:[%s4708_s13 + $0x30] sm:$0xff] }
 0xafb   :  { %3531 = vmatprep.subr.bf16.mxu0 %v3530_v6 }
 0xb6b   :  { %v1004_v61 = vpop.xlane.xlu0 %1003 }
 0xb6c   :  { %3789 = vrcp.f32 %v1004_v61  ;;  %v1361_v61 = vld [vmem:[%s4708_s13 + $0x8] sm:$0xff] }
 0xb6f   :  { %v1007_v63 = vpop.xlane.xlu0 %1006 }
 0xb70   :  { %3791 = vrcp.f32 %v1007_v63  ;;  %v3546_v63 = vpack.c.bf16 %v1361_v61, %v1360_v60 }
 0xb73   :  { %v680_v0 = vpop.permute.xlu0 %679 }
 0xb74   :  { %686 = vst.msk [vmem:[#allocation2] sm:$0xff] %vm685_vm4, %v680_v0  ;;  %v1362_v0 = vld [vmem:[%s4708_s13 + $0x10] sm:$0xff] }
 0xb75   :  { %897 = vst.msk [vmem:[#allocation2] sm:$0xff] %vm896_vm5, %v891_v55 }
 0xb76   :  { %v3790_v1 = vpop.eup %3789 }
 0xb77   :  { %v1010_v2 = vmul.f32 %v3790_v1, %v3786_v56  ;;  %v1363_v1 = vld [vmem:[%s4708_s13 + $0x18] sm:$0xff] }
 0xb79   :  { %3319 = vmatprep.mubr.msk.f32.mxu0 %vm365_vm3, %v1010_v2  ;;  %v3550_v2 = vpack.c.bf16 %v1363_v1, %v1362_v0 }
 0xb7a   :  { %v3792_v3 = vpop.eup %3791 }
 0xb7b   :  { %v1011_v4 = vmul.f32 %v3792_v3, %v3788_v59  ;;  %v1364_v3 = vld [vmem:[%s4708_s13 + $0x20] sm:$0xff] }
 0xb7d   :  { %3320 = vmatmul.mubr.msk.f32.vlgmr.msra.gmra.mrb[6].mxu0 %vm365_vm3, %v1011_v4  ;;  %v1365_v4 = vld [vmem:[%s4708_s13 + $0x28] sm:$0xff] }
 0xb7e   :  { %3533 = vmatpush3.bf16.msra.mxu0 %v3530_v6  ;;  %v3554_v62 = vpack.c.bf16 %v1365_v4, %v1364_v3  ;;  %v1367_v6 = vld [vmem:[%s4708_s13 + $0x38] sm:$0xff]  ;;  %v3057_v3 = vld [vmem:[%s4710_s15] ss:$0 sm:$0xff] }
 0xb7f   :  { %3535 = vmatprep.subr.bf16.mxu0 %v3534_v9  ;;  %v3558_v7 = vpack.c.bf16 %v1367_v6, %v1366_v5  ;;  %v3058_v6 = vld [vmem:[%s4711_s16] ss:$0 sm:$0xff] }
 0xb82   :  { %3537 = vmatpush3.bf16.msra.mxu0 %v3534_v9 }
 0xb83   :  { %3547 = vmatprep.subr.bf16.mxu0 %v3546_v63 }
 0xc50   :  { %v3321_v10 = vpop.f32.mrb[6].mxu0 }
 0xc51   :  { %1103 = vrot.lane.b32.xlu1 %v3321_v10, %s4727_s4  ;;  %v1090_v11 = vpop.f32.mrb[7].mxu0 }
 0xc52   :  { %1101 = vrot.lane.b32.xlu0 %v1090_v11, %s4727_s4 }
 0xcc3   :  { %v1104_v12 = vpop.permute.xlu1 %1103 }
 0xcc4   :  { %1109 = vst.msk [vmem:[#allocation2 + $0x8] sm:$0xff] %vm1107_vm6, %v1104_v12  ;;  %v1102_v13 = vpop.permute.xlu0 %1101 }
 0xcc5   :  { %1108 = vst.msk [vmem:[#allocation2] sm:$0xff] %vm1107_vm6, %v1102_v13 }
 0xccb   :  { %v1111_v15 = vld [vmem:[#allocation2 + $0x8] sm:$0xff] }
 0xccc   :  { %v1110_v14 = vld [vmem:[#allocation2] sm:$0xff] }
 0xccd   :  { %3330 = vmatprep.mubr.msk.f32.mxu0 %vm133_vm0, %v1110_v14 }
 0xcce   :  { %3331 = vmatmul.mubr.msk.f32.vlgmr.msra.gmra.mrb[8].mxu0 %vm133_vm0, %v1111_v15 }
 0xccf   :  { %3549 = vmatpush3.bf16.msra.mxu0 %v3546_v63 }
 0xcd0   :  { %3551 = vmatprep.subr.bf16.mxu0 %v3550_v2 }
 0xcd3   :  { %3553 = vmatpush3.bf16.msra.mxu0 %v3550_v2 }
 0xcd4   :  { %3555 = vmatprep.subr.bf16.mxu0 %v3554_v62 }
 0xcd7   :  { %3557 = vmatpush3.bf16.msra.mxu0 %v3554_v62 }
 0xcd8   :  { %3559 = vmatprep.subr.bf16.mxu0 %v3558_v7 }
 0xcdb   :  { %3561 = vmatpush3.bf16.msra.mxu0 %v3558_v7 }
 0xda1   :  { %v3332_v16 = vpop.f32.mrb[8].mxu0 }
 0xda2   :  { %v1201_v43 = vadd.f32 %v3332_v16, %v3046_v42  ;;  %v1195_v17 = vpop.f32.mrb[9].mxu0 }
 0xda3   :  { %v1196_v18 = vadd.f32 %v3046_v42, %v1195_v17 }
 0xda4   :  { %v1205_v19 = vadd.f32 %v1201_v43, %v4222_v35 }
 0xda5   :  { %v1204_v20 = vadd.f32 %v1196_v18, %v4218_v33  ;;  %v1250_v33 = vld [vmem:[%s4706_s11] sm:$0xff] }
 0xda6   :  { %v1211_v21 = vsel %vm133_vm0, %v1205_v19, 0.0  ;;  %v3538_v34 = vpack.c.bf16 %v1251_v32, %v1250_v33 }
 0xda7   :  { %1212 = vadd.xlane.f32.xlu1 %v1211_v21  ;;  %v1208_v22 = vsel %vm133_vm0, %v1204_v20, 0.0 }
 0xda8   :  { %1209 = vadd.xlane.f32.xlu0 %v1208_v22  ;;  %3539 = vmatprep.subr.bf16.mxu1 %v3538_v34 }
 0xda9   :  { %3541 = vmatpush3.bf16.msra.mxu1 %v3538_v34 }
 0xdaa   :  { %3543 = vmatprep.subr.bf16.mxu1 %v3542_v38 }
 0xdad   :  { %3545 = vmatpush3.bf16.msra.mxu1 %v3542_v38 }
 0xe34   :  { %v1213_v23 = vpop.xlane.xlu1 %1212 }
 0xe35   :  { %v1215_v24 = vmul.f32 0.03125, %v1213_v23  ;;  %v1210_v25 = vpop.xlane.xlu0 %1209 }
 0xe36   :  { %v1214_v26 = vmul.f32 0.03125, %v1210_v25 }
 0xe37   :  { %v1217_v27 = vsub.f32 %v1205_v19, %v1215_v24 }
 0xe38   :  { %v1216_v28 = vsub.f32 %v1204_v20, %v1214_v26 }
 0xe39   :  { %v1219_v31 = vmul.f32 %v1217_v27, %v1217_v27 }
 0xe3a   :  { %v1218_v29 = vmul.f32 %v1216_v28, %v1216_v28 }
 0xe3b   :  { %v1223_v35 = vsel %vm133_vm0, %v1219_v31, 0.0 }
 0xe3c   :  { %v1220_v30 = vsel %vm133_vm0, %v1218_v29, 0.0  ;;  %v3054_v29 = vld [vmem:[%s4709_s14] ss:$0 sm:$0xff] }
 0xe3d   :  { %1221 = vadd.xlane.f32.xlu0 %v1220_v30 }
 0xe41   :  { %1224 = vadd.xlane.f32.xlu0 %v1223_v35 }
 0xeca   :  { %v1222_v39 = vpop.xlane.xlu0 %1221 }
 0xecb   :  { %v1226_v40 = vmul.f32 0.03125, %v1222_v39 }
 0xecd   :  { %v1228_v44 = vadd.f32 1e-12, %v1226_v40 }
 0xece   :  { %v1225_v45 = vpop.xlane.xlu0 %1224 }
 0xecf   :  { %3793 = vrsqrt.f32 %v1228_v44  ;;  %v1227_v46 = vmul.f32 0.03125, %v1225_v45 }
 0xed1   :  { %v1229_v48 = vadd.f32 1e-12, %v1227_v46 }
 0xed3   :  { %3795 = vrsqrt.f32 %v1229_v48 }
 0xed9   :  { %v3794_v50 = vpop.eup %3793 }
 0xeda   :  { %v1232_v53 = vmul.f32 %v3794_v50, %v1216_v28 }
 0xedc   :  { %v1240_v54 = vmul.f32 %v3049_v52, %v1232_v53 }
 0xedd   :  { %v3796_v55 = vpop.eup %3795 }
 0xede   :  { %v1233_v56 = vmul.f32 %v3796_v55, %v1217_v27  ;;  %v1248_v57 = vadd.f32 %v3050_v41, %v1240_v54  ;;  %v3060_v54 = vld [vmem:[%s4700_s5 + $0x28] sm:$0xff] }
 0xee0   :  { %v1241_v58 = vmul.f32 %v3049_v52, %v1233_v56  ;;  %3341 = vmatprep.mubr.msk.f32.mxu1 %vm133_vm0, %v1248_v57  ;;  %v3061_v56 = vld [vmem:[%s4700_s5 + $0x30] sm:$0xff] }
 0xee2   :  { %v1249_v59 = vadd.f32 %v3050_v41, %v1241_v58  ;;  %v3059_v41 = vld [vmem:[%s4700_s5 + $0x20] sm:$0xff] }
 0xee3   :  { %v3562_v55 = vpack.c.bf16 %v3060_v54, %v3059_v41 }
 0xee4   :  { %3342 = vmatmul.mubr.msk.f32.vlgmr.msra.gmra.mrb[10].mxu1 %vm133_vm0, %v1249_v59 }
 0xee5   :  { %3563 = vmatprep.subr.bf16.mxu1 %v3562_v55 }
 0xee6   :  { %3565 = vmatpush3.bf16.msra.mxu1 %v3562_v55 }
 0xfb7   :  { %v3343_v9 = vpop.f32.mrb[10].mxu1 }
 0xfb8   :  { %v1339_v10 = vadd.f32 %v3343_v9, %v3051_v8  ;;  %v1333_v11 = vpop.f32.mrb[11].mxu1 }
 0xfb9   :  { %v1334_v12 = vadd.f32 %v3051_v8, %v1333_v11  ;;  %v3064_v11 = vld [vmem:[%s4701_s6 + $0x1] ss:$0 sm:$0xff] }
 0xfba   :  { %v1343_v13 = vmul.f32 %v1339_v10, %v1339_v10 }
 0xfbb   :  { %v1342_v14 = vmul.f32 %v1334_v12, %v1334_v12 }
 0xfbc   :  { %v1345_v15 = vmul.f32 %v1343_v13, %v1339_v10 }
 0xfbd   :  { %v1344_v42 = vmul.f32 %v1342_v14, %v1334_v12 }
 0xfbe   :  { %v1347_v16 = vmul.f32 0.044715, %v1345_v15 }
 0xfbf   :  { %v1346_v43 = vmul.f32 0.044715, %v1344_v42 }
 0xfc0   :  { %v1349_v17 = vadd.f32 %v1347_v16, %v1339_v10 }
 0xfc1   :  { %v1348_v18 = vadd.f32 %v1346_v43, %v1334_v12 }
 0xfc2   :  { %v1351_v19 = vmul.f32 0.7978846, %v1349_v17 }
 0xfc3   :  { %v1350_v20 = vmul.f32 0.7978846, %v1348_v18 }
 0xfc4   :  { %3797 = vtanh.f32 %v1351_v19 }
 0xfc5   :  { %3799 = vtanh.f32 %v1350_v20 }
 0xfce   :  { %v3798_v21 = vpop.eup %3797 }
 0xfcf   :  { %v3800_v22 = vpop.eup %3799  ;;  %v1355_v23 = vadd.f32 1.0, %v3798_v21 }
 0xfd0   :  { %v1354_v24 = vadd.f32 1.0, %v3800_v22 }
 0xfd1   :  { %v1357_v25 = vmul.f32 0.5, %v1355_v23 }
 0xfd2   :  { %v1356_v26 = vmul.f32 0.5, %v1354_v24 }
 0xfd3   :  { %v1359_v28 = vmul.f32 %v1357_v25, %v1339_v10 }
 0xfd4   :  { %v1358_v27 = vmul.f32 %v1356_v26, %v1334_v12 }
 0xfd6   :  { %3360 = vmatprep.mubr.msk.f32.mxu0 %vm1375_vm7, %v1358_v27 }
 0xfd7   :  { %3361 = vmatmul.mubr.msk.f32.vlgmr.msra.gmra.mrb[10].mxu0 %vm1375_vm7, %v1359_v28 }
0x10aa   :  { %v3362_v30 = vpop.f32.mrb[10].mxu0 }
0x10ab   :  { %v1454_v31 = vadd.f32 %v3362_v30, %v3054_v29  ;;  %v1448_v35 = vpop.f32.mrb[11].mxu0 }
0x10ac   :  { %v1449_v33 = vadd.f32 %v3054_v29, %v1448_v35 }
0x10ad   :  { %v1458_v32 = vadd.f32 %v1454_v31, %v1249_v59 }
0x10ae   :  { %v1457_v34 = vadd.f32 %v1449_v33, %v1248_v57  ;;  %v3062_v57 = vld [vmem:[%s4700_s5 + $0x38] sm:$0xff] }
0x10af   :  { %v1464_v36 = vsel %vm133_vm0, %v1458_v32, 0.0  ;;  %v3566_v58 = vpack.c.bf16 %v3062_v57, %v3061_v56 }
0x10b0   :  { %1465 = vadd.xlane.f32.xlu1 %v1464_v36  ;;  %v1461_v37 = vsel %vm133_vm0, %v1457_v34, 0.0 }
0x10b1   :  { %1462 = vadd.xlane.f32.xlu0 %v1461_v37  ;;  %3567 = vmatprep.subr.bf16.mxu1 %v3566_v58 }
0x10b2   :  { %3569 = vmatpush3.bf16.msra.mxu1 %v3566_v58 }
0x113d   :  { %v1466_v38 = vpop.xlane.xlu1 %1465 }
0x113e   :  { %v1468_v39 = vmul.f32 0.03125, %v1466_v38  ;;  %v1463_v40 = vpop.xlane.xlu0 %1462 }
0x113f   :  { %v1467_v44 = vmul.f32 0.03125, %v1463_v40 }
0x1140   :  { %v1470_v45 = vsub.f32 %v1458_v32, %v1468_v39 }
0x1141   :  { %v1469_v46 = vsub.f32 %v1457_v34, %v1467_v44 }
0x1142   :  { %v1472_v48 = vmul.f32 %v1470_v45, %v1470_v45 }
0x1143   :  { %v1471_v50 = vmul.f32 %v1469_v46, %v1469_v46 }
0x1144   :  { %v1476_v52 = vsel %vm133_vm0, %v1472_v48, 0.0 }
0x1145   :  { %1477 = vadd.xlane.f32.xlu1 %v1476_v52  ;;  %v1473_v53 = vsel %vm133_vm0, %v1471_v50, 0.0 }
0x1146   :  { %1474 = vadd.xlane.f32.xlu0 %v1473_v53 }
0x11d2   :  { %v1478_v59 = vpop.xlane.xlu1 %1477 }
0x11d3   :  { %v1480_v60 = vmul.f32 0.03125, %v1478_v59  ;;  %v1475_v61 = vpop.xlane.xlu0 %1474 }
0x11d4   :  { %v1479_v63 = vmul.f32 0.03125, %v1475_v61 }
0x11d5   :  { %v1482_v0 = vadd.f32 1e-12, %v1480_v60 }
0x11d6   :  { %v1481_v1 = vadd.f32 1e-12, %v1479_v63 }
0x11d7   :  { %3801 = vrsqrt.f32 %v1482_v0 }
0x11d8   :  { %3803 = vrsqrt.f32 %v1481_v1 }
0x11e1   :  { %v3802_v2 = vpop.eup %3801 }
0x11e2   :  { %v3804_v4 = vpop.eup %3803  ;;  %v1486_v62 = vmul.f32 %v3802_v2, %v1470_v45 }
0x11e3   :  { %v1485_v5 = vmul.f32 %v3804_v4, %v1469_v46 }
0x11e4   :  { %v1494_v7 = vmul.f32 %v3057_v3, %v1486_v62 }
0x11e5   :  { %v1493_v8 = vmul.f32 %v3057_v3, %v1485_v5 }
0x11e6   :  { %v4447_v10 = vadd.f32 %v3058_v6, %v1494_v7 }
0x11e7   :  { %v4445_v9 = vadd.f32 %v3058_v6, %v1493_v8 }
0x11e9   :  { %3371 = vmatprep.mubr.msk.f32.mxu1 %vm133_vm0, %v4445_v9 }
0x11ea   :  { %3372 = vmatmul.mubr.msk.f32.vlgmr.msra.gmra.mrb[12].mxu1 %vm133_vm0, %v4447_v10 }
0x12bd   :  { %v3373_v12 = vpop.f32.mrb[12].mxu1 }
0x12be   :  { %v1594_v13 = vadd.f32 %v3373_v12, %v3064_v11  ;;  %v1588_v14 = vpop.f32.mrb[13].mxu1 }
0x12bf   :  { %v1589_v15 = vadd.f32 %v3064_v11, %v1588_v14 }
0x12c0   :  { %v4468_v43 = vmul.f32 0.35355338, %v1594_v13 }
0x12c1   :  { %v4456_v42 = vpack.i.bf16 %v1594_v13, %v1589_v15  ;;  %v4458_v16 = vmul.f32 0.35355338, %v1589_v15 }
0x12c3   :  { %3721 = vrot.lane.b32.xlu1 %v4456_v42, %s4007_s9  ;;  %3716 = vrot.lane.b32.xlu0 %v4456_v42, %s4006_s29 }
0x12c4   :  { %3378 = vmatprep.mubr.msk.f32.mxu1 %vm279_vm1, %v4458_v16 }
0x12c7   :  { %1801 = vrot.lane.b32.xlu1 %v4458_v16, %s4008_s21 }
0x12cb   :  { %1803 = vrot.lane.b32.xlu1 %v4468_v43, %s4008_s21 }
0x1335   :  { %v3722_v17 = vpop.permute.xlu1 %3721  ;;  %v3717_v18 = vpop.permute.xlu0 %3716 }
0x1336   :  { %v3724_v19 = vunpack.i.h.bf16 %v3722_v17  ;;  %v3723_v20 = vunpack.i.l.bf16 %v3722_v17  ;;  %v3719_v21 = vunpack.i.h.bf16 %v3717_v18  ;;  %v3718_v22 = vunpack.i.l.bf16 %v3717_v18 }
0x1338   :  { %v3570_v23 = vpack.c.bf16 %v3719_v21, %v3718_v22  ;;  %v3580_v24 = vpack.c.bf16 %v3724_v19, %v3723_v20 }
0x1339   :  { %v1802_v25 = vpop.permute.xlu1 %1801 }
0x133a   :  { %3572 = vmatprep.subr.msk.bf16.mxu1 %vm4247_vm2, %v3570_v23 }
0x133b   :  { %3575 = vmatpush3.bf16.xpose.msk.msra.mxu1 %vm4247_vm2, %v3570_v23 }
0x133c   :  { %3582 = vmatprep.subr.msk.bf16.mxu1 %vm4247_vm2, %v3580_v24 }
0x133d   :  { %v1804_v26 = vpop.permute.xlu1 %1803 }
0x1342   :  { %3379 = vmatmul.mubr.msk.f32.vlgmr.msra.gmra.mrb[14].mxu1 %vm279_vm1, %v4468_v43 }
0x1343   :  { %3585 = vmatpush3.bf16.xpose.msk.msra.mxu1 %vm4247_vm2, %v3580_v24  ;;  %3392 = vmatprep.mubr.msk.f32.mxu1 %vm279_vm1, %v1802_v25 }
0x134a   :  { %3393 = vmatmul.mubr.msk.f32.vlgmr.msra.gmra.mrb[16].mxu1 %vm279_vm1, %v1804_v26 }
0x1415   :  { %v3380_v27 = vpop.f32.mrb[14].mxu1 }
0x1416   :  { %v1687_v28 = vadd.f32 %v3380_v27, %v4265_v51  ;;  %v1681_v29 = vpop.f32.mrb[15].mxu1 }
0x1417   :  { %v1682_v30 = vadd.f32 %v1681_v29, %v4260_v49 }
0x1418   :  { %v1693_v31 = vsel %vm365_vm3, %v1687_v28, -inf }
0x1419   :  { %1694 = vmax.xlane.f32.xlu1 %v1693_v31  ;;  %v1690_v35 = vsel %vm365_vm3, %v1682_v30, -inf }
0x141a   :  { %1691 = vmax.xlane.f32.xlu0 %v1690_v35  ;;  %v3857_v35 = vld [vmem:[%s4740_s24 + $0x8] sm:$0xff] }
0x141d   :  { %v3394_v33 = vpop.f32.mrb[16].mxu1 }
0x141e   :  { %v1883_v32 = vpop.f32.mrb[17].mxu1  ;;  %v1889_v36 = vadd.f32 %v3394_v33, %v4265_v51 }
0x141f   :  { %v1884_v34 = vadd.f32 %v1883_v32, %v4260_v49 }
0x1420   :  { %v1895_v38 = vsel %vm365_vm3, %v1889_v36, -inf }
0x1421   :  { %v1892_v37 = vsel %vm365_vm3, %v1884_v34, -inf }
0x1422   :  { %1893 = vmax.xlane.f32.xlu0 %v1892_v37 }
0x1426   :  { %1896 = vmax.xlane.f32.xlu0 %v1895_v38 }
0x14a6   :  { %v1695_v39 = vpop.xlane.xlu1 %1694 }
0x14a7   :  { %v1697_v40 = vsub.f32 %v1687_v28, %v1695_v39  ;;  %v1692_v44 = vpop.xlane.xlu0 %1691 }
0x14a8   :  { %v1696_v45 = vsub.f32 %v1682_v30, %v1692_v44 }
0x14a9   :  { %v1700_v46 = vmul.f32 1.442695, %v1697_v40 }
0x14aa   :  { %v1698_v48 = vmul.f32 1.442695, %v1696_v45 }
0x14ab   :  { %3805 = vpow2.f32 %v1700_v46 }
0x14ac   :  { %3807 = vpow2.f32 %v1698_v48 }
0x14af   :  { %v1894_v50 = vpop.xlane.xlu0 %1893 }
0x14b0   :  { %v1898_v52 = vsub.f32 %v1884_v34, %v1894_v50  ;;  %v3858_v34 = vld [vmem:[%s4740_s24] sm:$0xff]  ;;  %s4741_s24 = smov 40  }
0x14b2   :  { %v1900_v53 = vmul.f32 1.442695, %v1898_v52 }
0x14b3   :  { %v1897_v49 = vpop.xlane.xlu0 %1896 }
0x14b4   :  { %3809 = vpow2.f32 %v1900_v53  ;;  %v1899_v51 = vsub.f32 %v1889_v36, %v1897_v49 }
0x14b5   :  { %v3806_v41 = vpop.eup %3805 }
0x14b6   :  { %v3808_v54 = vpop.eup %3807  ;;  %v1902_v55 = vmul.f32 1.442695, %v1899_v51  ;;  %v1705_v56 = vsel %vm365_vm3, %v3806_v41, 0.0 }
0x14b7   :  { %1706 = vadd.xlane.f32.xlu1 %v1705_v56  ;;  %v1702_v57 = vsel %vm365_vm3, %v3808_v54, 0.0 }
0x14b8   :  { %3811 = vpow2.f32 %v1902_v55  ;;  %1703 = vadd.xlane.f32.xlu0 %v1702_v57 }
0x14be   :  { %v3810_v58 = vpop.eup %3809 }
0x14bf   :  { %v1904_v59 = vsel %vm365_vm3, %v3810_v58, 0.0 }
0x14c0   :  { %1905 = vadd.xlane.f32.xlu0 %v1904_v59 }
0x14c2   :  { %v3812_v60 = vpop.eup %3811 }
0x14c3   :  { %v1907_v61 = vsel %vm365_vm3, %v3812_v60, 0.0 }
0x14c4   :  { %1908 = vadd.xlane.f32.xlu1 %v1907_v61 }
0x14d5   :  { %3731 = vrot.lane.b32.xlu1 %v4456_v42, %s4010_s30  ;;  %s4743_s30 = smov 16  }
0x14d6   :  { %3726 = vrot.lane.b32.xlu0 %v4456_v42, %s4009_s12  ;;  %s4742_s12 = smov 8  }
0x14d9   :  { %3736 = vrot.lane.b32.xlu1 %v4456_v42, %s4012_s1 }
0x14da   :  { %2013 = vrot.lane.b32.xlu0 %v4468_v43, %s4011_s25 }
0x14dd   :  { %2011 = vrot.lane.b32.xlu1 %v4458_v16, %s4011_s25 }
0x1544   :  { %v1707_v0 = vpop.xlane.xlu1 %1706 }
0x1545   :  { %v1704_v63 = vpop.xlane.xlu0 %1703 }
0x1546   :  { %3813 = vrcp.f32 %v1704_v63 }
0x1547   :  { %3815 = vrcp.f32 %v1707_v0 }
0x154d   :  { %v1906_v1 = vpop.xlane.xlu0 %1905 }
0x154e   :  { %3817 = vrcp.f32 %v1906_v1 }
0x1550   :  { %v3814_v2 = vpop.eup %3813 }
0x1551   :  { %v1909_v3 = vpop.xlane.xlu1 %1908  ;;  %v3727_v4 = vpop.permute.xlu0 %3726  ;;  %v1710_v62 = vmul.f32 %v3814_v2, %v3808_v54 }
0x1552   :  { %3819 = vrcp.f32 %v1909_v3  ;;  %v3729_v5 = vunpack.i.h.bf16 %v3727_v4  ;;  %v3728_v6 = vunpack.i.l.bf16 %v3727_v4  ;;  %v3816_v8 = vpop.eup %3815 }
0x1553   :  { %3385 = vmatprep.mubr.msk.f32.mxu0 %vm365_vm3, %v1710_v62  ;;  %v1711_v15 = vmul.f32 %v3816_v8, %v3806_v41 }
0x1554   :  { %v3576_v7 = vpack.c.bf16 %v3729_v5, %v3728_v6 }
0x1555   :  { %v3732_v11 = vpop.permute.xlu1 %3731  ;;  %v2014_v26 = vpop.permute.xlu0 %2013 }
0x1556   :  { %v3734_v12 = vunpack.i.h.bf16 %v3732_v11  ;;  %v3733_v13 = vunpack.i.l.bf16 %v3732_v11  ;;  %3577 = vmatprep.subr.bf16.mxu0 %v3576_v7 }
0x1557   :  { %3579 = vmatpush3.bf16.msra.mxu0 %v3576_v7 }
0x1558   :  { %v3818_v14 = vpop.eup %3817  ;;  %v3586_v17 = vpack.c.bf16 %v3734_v12, %v3733_v13 }
0x1559   :  { %v3737_v18 = vpop.permute.xlu1 %3736  ;;  %v1912_v19 = vmul.f32 %v3818_v14, %v3810_v58 }
0x155a   :  { %v3739_v20 = vunpack.i.h.bf16 %v3737_v18  ;;  %v3738_v21 = vunpack.i.l.bf16 %v3737_v18  ;;  %3386 = vmatmul.mubr.msk.f32.vlgmr.msra.gmra.mrb[12].mxu0 %vm365_vm3, %v1711_v15  ;;  %3587 = vmatprep.subr.bf16.mxu0 %v3586_v17 }
0x155b   :  { %3589 = vmatpush3.bf16.msra.mxu0 %v3586_v17  ;;  %3399 = vmatprep.mubr.msk.f32.mxu0 %vm365_vm3, %v1912_v19 }
0x155c   :  { %v3820_v22 = vpop.eup %3819  ;;  %v3590_v23 = vpack.c.bf16 %v3739_v20, %v3738_v21 }
0x155d   :  { %v1913_v24 = vmul.f32 %v3820_v22, %v3812_v60  ;;  %v2012_v25 = vpop.permute.xlu1 %2011 }
0x155e   :  { %3592 = vmatprep.subr.msk.bf16.mxu0 %vm4247_vm2, %v3590_v23 }
0x155f   :  { %3400 = vmatmul.mubr.msk.f32.vlgmr.msra.gmra.mrb[14].mxu0 %vm365_vm3, %v1913_v24 }
0x1560   :  { %3406 = vmatprep.mubr.msk.f32.mxu0 %vm279_vm1, %v2012_v25 }
0x1564   :  { %3595 = vmatpush3.bf16.xpose.msk.msra.mxu0 %vm4247_vm2, %v3590_v23 }
0x156b   :  { %3407 = vmatmul.mubr.msk.f32.vlgmr.msra.gmra.mrb[16].mxu0 %vm279_vm1, %v2014_v26 }
0x162d   :  { %v3387_v27 = vpop.f32.mrb[12].mxu0 }
0x162e   :  { %1800 = vst.msk [vmem:[#allocation2 + $0x8] sm:$0xff] %vm279_vm1, %v3387_v27  ;;  %v1790_v28 = vpop.f32.mrb[13].mxu0 }
0x162f   :  { %1799 = vst.msk [vmem:[#allocation2] sm:$0xff] %vm279_vm1, %v1790_v28 }
0x1632   :  { %v4518_v29 = vpop.f32.mrb[14].mxu0 }
0x1633   :  { %v4520_v30 = vpop.f32.mrb[15].mxu0 }
0x163e   :  { %v3408_v31 = vpop.f32.mrb[16].mxu0 }
0x163f   :  { %v2099_v33 = vadd.f32 %v3857_v35, %v3408_v31  ;;  %v2093_v32 = vpop.f32.mrb[17].mxu0 }
0x1640   :  { %v2094_v36 = vadd.f32 %v3858_v34, %v2093_v32 }
0x1641   :  { %v2105_v37 = vsel %vm365_vm3, %v2099_v33, -inf }
0x1642   :  { %2106 = vmax.xlane.f32.xlu0 %v2105_v37  ;;  %v2102_v38 = vsel %vm365_vm3, %v2094_v36, -inf }
0x1643   :  { %2103 = vmax.xlane.f32.xlu1 %v2102_v38  ;;  %v3093_v38 = vld [vmem:[%s4702_s7 + $0x30] sm:$0xff] }
0x1654   :  { %3741 = vrot.lane.b32.xlu1 %v4456_v42, %s4013_s0 }
0x1658   :  { %2221 = vrot.lane.b32.xlu1 %v4458_v16, %s4014_s23 }
0x165c   :  { %2223 = vrot.lane.b32.xlu1 %v4468_v43, %s4014_s23  ;;  %s4745_s23 = sld [smem:[#allocation19_spill]] }
0x16cf   :  { %v2107_v39 = vpop.xlane.xlu0 %2106 }
0x16d0   :  { %v2109_v40 = vsub.f32 %v2099_v33, %v2107_v39  ;;  %v2104_v44 = vpop.xlane.xlu1 %2103  ;;  %v3094_v39 = vld [vmem:[%s4702_s7 + $0x38] sm:$0xff] }
0x16d1   :  { %v2108_v45 = vsub.f32 %v2094_v36, %v2104_v44  ;;  %v3092_v36 = vld [vmem:[%s4702_s7 + $0x28] sm:$0xff] }
0x16d2   :  { %v2112_v46 = vmul.f32 1.442695, %v2109_v40  ;;  %v3614_v40 = vpack.c.bf16 %v3094_v39, %v3093_v38 }
0x16d3   :  { %v2110_v48 = vmul.f32 1.442695, %v2108_v45 }
0x16d4   :  { %3821 = vpow2.f32 %v2112_v46  ;;  %v3742_v50 = vpop.permute.xlu1 %3741 }
0x16d5   :  { %v3744_v52 = vunpack.i.h.bf16 %v3742_v50  ;;  %v3743_v53 = vunpack.i.l.bf16 %v3742_v50  ;;  %3823 = vpow2.f32 %v2110_v48 }
0x16d7   :  { %v3596_v49 = vpack.c.bf16 %v3744_v52, %v3743_v53  ;;  %v3096_v53 = vld [vmem:[%s4703_s8 + $0x1] ss:$0 sm:$0xff] }
0x16d8   :  { %v2222_v1 = vpop.permute.xlu1 %2221 }
0x16d9   :  { %3597 = vmatprep.subr.bf16.mxu1 %v3596_v49 }
0x16da   :  { %3599 = vmatpush3.bf16.msra.mxu1 %v3596_v49 }
0x16dc   :  { %v2224_v2 = vpop.permute.xlu1 %2223 }
0x16de   :  { %v3822_v51 = vpop.eup %3821 }
0x16df   :  { %v2117_v16 = vsel %vm365_vm3, %v3822_v51, 0.0  ;;  %v3824_v41 = vpop.eup %3823 }
0x16e0   :  { %2118 = vadd.xlane.f32.xlu0 %v2117_v16  ;;  %v2114_v43 = vsel %vm365_vm3, %v3824_v41, 0.0 }
0x16e4   :  { %2115 = vadd.xlane.f32.xlu0 %v2114_v43 }
0x16fa   :  { %3746 = vrot.lane.b32.xlu0 %v4456_v42, %s4015_s26 }
0x176d   :  { %v2119_v54 = vpop.xlane.xlu0 %2118 }
0x176e   :  { %3825 = vrcp.f32 %v2119_v54 }
0x1771   :  { %v2116_v55 = vpop.xlane.xlu0 %2115 }
0x1772   :  { %3827 = vrcp.f32 %v2116_v55 }
0x1775   :  { %v3747_v56 = vpop.permute.xlu0 %3746 }
0x1776   :  { %v3749_v57 = vunpack.i.h.bf16 %v3747_v56  ;;  %v3748_v58 = vunpack.i.l.bf16 %v3747_v56 }
0x1778   :  { %v3600_v59 = vpack.c.bf16 %v3749_v57, %v3748_v58  ;;  %v3826_v60 = vpop.eup %3825 }
0x1779   :  { %v2123_v0 = vmul.f32 %v3826_v60, %v3822_v51 }
0x177a   :  { %3602 = vmatprep.subr.msk.bf16.mxu1 %vm4247_vm2, %v3600_v59 }
0x177c   :  { %v3828_v61 = vpop.eup %3827 }
0x177d   :  { %v2122_v63 = vmul.f32 %v3828_v61, %v3824_v41 }
0x177f   :  { %3413 = vmatprep.mubr.msk.f32.mxu1 %vm365_vm3, %v2122_v63 }
0x1780   :  { %3414 = vmatmul.mubr.msk.f32.vlgmr.msra.gmra.mrb[18].mxu1 %vm365_vm3, %v2123_v0 }
0x1781   :  { %3605 = vmatpush3.bf16.xpose.msk.msra.mxu1 %vm4247_vm2, %v3600_v59  ;;  %3420 = vmatprep.mubr.msk.f32.mxu1 %vm279_vm1, %v2222_v1 }
0x1788   :  { %3421 = vmatmul.mubr.msk.f32.vlgmr.msra.gmra.mrb[20].mxu1 %vm279_vm1, %v2224_v2 }
0x1853   :  { %v3415_v3 = vpop.f32.mrb[18].mxu1 }
0x1854   :  { %v2202_v4 = vpop.f32.mrb[19].mxu1 }
0x185b   :  { %v3422_v62 = vpop.f32.mrb[20].mxu1 }
0x185c   :  { %v2309_v5 = vadd.f32 %v3857_v35, %v3422_v62  ;;  %v2303_v6 = vpop.f32.mrb[21].mxu1  ;;  %v3103_v62 = vld [vmem:[%s4706_s11 + $0x30] sm:$0xff] }
0x185d   :  { %v2304_v7 = vadd.f32 %v3858_v34, %v2303_v6 }
0x185e   :  { %v2315_v8 = vsel %vm365_vm3, %v2309_v5, -inf }
0x185f   :  { %2316 = vmax.xlane.f32.xlu0 %v2315_v8  ;;  %v2312_v11 = vsel %vm365_vm3, %v2304_v7, -inf }
0x1860   :  { %2313 = vmax.xlane.f32.xlu1 %v2312_v11 }
0x1871   :  { %3751 = vrot.lane.b32.xlu1 %v4456_v42, %s4741_s24 }
0x1875   :  { %2005 = vrot.lane.b32.xlu1 %v4518_v29, %s4742_s12 }
0x1879   :  { %2213 = vrot.lane.b32.xlu1 %v2202_v4, %s4743_s30 }
0x187d   :  { %2215 = vrot.lane.b32.xlu1 %v3415_v3, %s4743_s30  ;;  %v3102_v3 = vld [vmem:[%s4706_s11 + $0x28] sm:$0xff] }
0x18ec   :  { %v2317_v47 = vpop.xlane.xlu0 %2316 }
0x18ed   :  { %v2319_v12 = vsub.f32 %v2309_v5, %v2317_v47  ;;  %v2314_v13 = vpop.xlane.xlu1 %2313  ;;  %v3104_v5 = vld [vmem:[%s4706_s11 + $0x38] sm:$0xff] }
0x18ee   :  { %v2318_v14 = vsub.f32 %v2304_v7, %v2314_v13  ;;  %v3622_v6 = vpack.c.bf16 %v3104_v5, %v3103_v62 }
0x18ef   :  { %v2322_v15 = vmul.f32 1.442695, %v2319_v12 }
0x18f0   :  { %v2320_v17 = vmul.f32 1.442695, %v2318_v14 }
0x18f1   :  { %v3752_v18 = vpop.permute.xlu1 %3751 }
0x18f2   :  { %3829 = vpow2.f32 %v2320_v17  ;;  %v3754_v19 = vunpack.i.h.bf16 %v3752_v18  ;;  %v3753_v20 = vunpack.i.l.bf16 %v3752_v18  ;;  %v3100_v18 = vld [vmem:[#allocation9 + $0x1] ss:$0 sm:$0xff] }
0x18f3   :  { %3831 = vpow2.f32 %v2322_v15  ;;  %v3099_v15 = vld [vmem:[#allocation8 + $0x1] ss:$0 sm:$0xff] }
0x18f4   :  { %v3606_v21 = vpack.c.bf16 %v3754_v19, %v3753_v20 }
0x18f5   :  { %v2006_v42 = vpop.permute.xlu1 %2005 }
0x18f6   :  { %2010 = vst.msk [vmem:[#allocation2 + $0x8] sm:$0xff] %vm685_vm4, %v2006_v42  ;;  %3607 = vmatprep.subr.bf16.mxu0 %v3606_v21 }
0x18f7   :  { %3609 = vmatpush3.bf16.msra.mxu0 %v3606_v21 }
0x18f9   :  { %v2214_v22 = vpop.permute.xlu1 %2213 }
0x18fc   :  { %v3830_v23 = vpop.eup %3829 }
0x18fd   :  { %v2216_v24 = vpop.permute.xlu1 %2215  ;;  %v2324_v25 = vsel %vm365_vm3, %v3830_v23, 0.0  ;;  %v3832_v26 = vpop.eup %3831 }
0x18fe   :  { %2220 = vst.msk [vmem:[#allocation2 + $0x8] sm:$0xff] %vm896_vm5, %v2216_v24  ;;  %2325 = vadd.xlane.f32.xlu0 %v2324_v25  ;;  %v2327_v27 = vsel %vm365_vm3, %v3832_v26, 0.0  ;;  %v3108_v24 = vld [vmem:[%s4708_s13 + $0x40] sm:$0xff]  ;;  %v3109_v25 = vld [vmem:[%s4708_s13 + $0x48] sm:$0xff] }
0x1902   :  { %2328 = vadd.xlane.f32.xlu0 %v2327_v27  ;;  %v3110_v27 = vld [vmem:[%s4708_s13 + $0x50] sm:$0xff] }
0x1918   :  { %2003 = vrot.lane.b32.xlu0 %v4520_v30, %s4742_s12  ;;  %v3091_v30 = vld [vmem:[%s4702_s7 + $0x20] sm:$0xff] }
0x1919   :  { %v3610_v37 = vpack.c.bf16 %v3092_v36, %v3091_v30  ;;  %v3105_v36 = vld [vmem:[#allocation11 + $0x1] ss:$0 sm:$0xff] }
0x191b   :  { %3611 = vmatprep.subr.bf16.mxu0 %v3610_v37 }
0x198b   :  { %v2326_v28 = vpop.xlane.xlu0 %2325 }
0x198c   :  { %3833 = vrcp.f32 %v2326_v28  ;;  %v3111_v28 = vld [vmem:[%s4708_s13 + $0x58] sm:$0xff] }
0x198f   :  { %v2329_v29 = vpop.xlane.xlu0 %2328 }
0x1990   :  { %3835 = vrcp.f32 %v2329_v29  ;;  %v3630_v29 = vpack.c.bf16 %v3111_v28, %v3110_v27  ;;  %v3122_v27 = vld [vmem:[%s4710_s15 + $0x1] ss:$0 sm:$0xff] }
0x1993   :  { %v2004_v31 = vpop.permute.xlu0 %2003 }
0x1994   :  { %2009 = vst.msk [vmem:[#allocation2] sm:$0xff] %vm685_vm4, %v2004_v31  ;;  %v3112_v31 = vld [vmem:[%s4708_s13 + $0x60] sm:$0xff] }
0x1995   :  { %2219 = vst.msk [vmem:[#allocation2] sm:$0xff] %vm896_vm5, %v2214_v22 }
0x1996   :  { %v3834_v35 = vpop.eup %3833 }
0x1997   :  { %v2332_v33 = vmul.f32 %v3834_v35, %v3830_v23  ;;  %v3113_v35 = vld [vmem:[%s4708_s13 + $0x68] sm:$0xff] }
0x1999   :  { %3427 = vmatprep.mubr.msk.f32.mxu0 %vm365_vm3, %v2332_v33  ;;  %v3634_v33 = vpack.c.bf16 %v3113_v35, %v3112_v31  ;;  %v3123_v35 = vld [vmem:[%s4711_s16 + $0x1] ss:$0 sm:$0xff] }
0x199a   :  { %v3836_v32 = vpop.eup %3835 }
0x199b   :  { %v2333_v34 = vmul.f32 %v3836_v32, %v3832_v26  ;;  %v3626_v26 = vpack.c.bf16 %v3109_v25, %v3108_v24  ;;  %v3114_v32 = vld [vmem:[%s4708_s13 + $0x70] sm:$0xff] }
0x199d   :  { %3428 = vmatmul.mubr.msk.f32.vlgmr.msra.gmra.mrb[18].mxu0 %vm365_vm3, %v2333_v34  ;;  %v3115_v34 = vld [vmem:[%s4708_s13 + $0x78] sm:$0xff] }
0x199e   :  { %3613 = vmatpush3.bf16.msra.mxu0 %v3610_v37  ;;  %v3638_v30 = vpack.c.bf16 %v3115_v34, %v3114_v32 }
0x199f   :  { %3615 = vmatprep.subr.bf16.mxu0 %v3614_v40 }
0x19a2   :  { %3617 = vmatpush3.bf16.msra.mxu0 %v3614_v40 }
0x19a3   :  { %3627 = vmatprep.subr.bf16.mxu0 %v3626_v26 }
0x1a70   :  { %v3429_v44 = vpop.f32.mrb[18].mxu0 }
0x1a71   :  { %2425 = vrot.lane.b32.xlu1 %v3429_v44, %s4744_s20  ;;  %v2412_v45 = vpop.f32.mrb[19].mxu0 }
0x1a72   :  { %2423 = vrot.lane.b32.xlu0 %v2412_v45, %s4744_s20 }
0x1ae3   :  { %v2426_v46 = vpop.permute.xlu1 %2425 }
0x1ae4   :  { %2430 = vst.msk [vmem:[#allocation2 + $0x8] sm:$0xff] %vm1107_vm6, %v2426_v46  ;;  %v2424_v48 = vpop.permute.xlu0 %2423 }
0x1ae5   :  { %2429 = vst.msk [vmem:[#allocation2] sm:$0xff] %vm1107_vm6, %v2424_v48 }
0x1aeb   :  { %v2432_v52 = vld [vmem:[#allocation2 + $0x8] sm:$0xff] }
0x1aec   :  { %v2431_v50 = vld [vmem:[#allocation2] sm:$0xff] }
0x1aed   :  { %3438 = vmatprep.mubr.msk.f32.mxu0 %vm133_vm0, %v2431_v50 }
0x1aee   :  { %3439 = vmatmul.mubr.msk.f32.vlgmr.msra.gmra.mrb[20].mxu0 %vm133_vm0, %v2432_v52 }
0x1aef   :  { %3629 = vmatpush3.bf16.msra.mxu0 %v3626_v26 }
0x1af0   :  { %3631 = vmatprep.subr.bf16.mxu0 %v3630_v29 }
0x1af3   :  { %3633 = vmatpush3.bf16.msra.mxu0 %v3630_v29 }
0x1af4   :  { %3635 = vmatprep.subr.bf16.mxu0 %v3634_v33 }
0x1af7   :  { %3637 = vmatpush3.bf16.msra.mxu0 %v3634_v33 }
0x1af8   :  { %3639 = vmatprep.subr.bf16.mxu0 %v3638_v30 }
0x1afb   :  { %3641 = vmatpush3.bf16.msra.mxu0 %v3638_v30 }
0x1bc1   :  { %v3440_v49 = vpop.f32.mrb[20].mxu0 }
0x1bc2   :  { %v2524_v51 = vadd.f32 %v3440_v49, %v3096_v53  ;;  %v2518_v16 = vpop.f32.mrb[21].mxu0 }
0x1bc3   :  { %v2519_v41 = vadd.f32 %v3096_v53, %v2518_v16 }
0x1bc4   :  { %v2528_v43 = vadd.f32 %v2524_v51, %v4447_v10 }
0x1bc5   :  { %v2527_v54 = vadd.f32 %v2519_v41, %v4445_v9  ;;  %v3101_v9 = vld [vmem:[%s4706_s11 + $0x20] sm:$0xff] }
0x1bc6   :  { %v2536_v55 = vsel %vm133_vm0, %v2528_v43, 0.0  ;;  %v3618_v4 = vpack.c.bf16 %v3102_v3, %v3101_v9 }
0x1bc7   :  { %2537 = vadd.xlane.f32.xlu1 %v2536_v55  ;;  %v2533_v56 = vsel %vm133_vm0, %v2527_v54, 0.0 }
0x1bc8   :  { %2534 = vadd.xlane.f32.xlu0 %v2533_v56  ;;  %3619 = vmatprep.subr.bf16.mxu1 %v3618_v4 }
0x1bc9   :  { %3621 = vmatpush3.bf16.msra.mxu1 %v3618_v4 }
0x1bca   :  { %3623 = vmatprep.subr.bf16.mxu1 %v3622_v6 }
0x1bcd   :  { %3625 = vmatpush3.bf16.msra.mxu1 %v3622_v6 }
0x1c54   :  { %v2538_v57 = vpop.xlane.xlu1 %2537 }
0x1c55   :  { %v2540_v58 = vmul.f32 0.03125, %v2538_v57  ;;  %v2535_v59 = vpop.xlane.xlu0 %2534 }
0x1c56   :  { %v2539_v60 = vmul.f32 0.03125, %v2535_v59 }
0x1c57   :  { %v2542_v61 = vsub.f32 %v2528_v43, %v2540_v58 }
0x1c58   :  { %v2541_v63 = vsub.f32 %v2527_v54, %v2539_v60  ;;  %v3117_v60 = vld [vmem:[%s4709_s14 + $0x1] ss:$0 sm:$0xff] }
0x1c59   :  { %v2544_v2 = vmul.f32 %v2542_v61, %v2542_v61 }
0x1c5a   :  { %v2543_v0 = vmul.f32 %v2541_v63, %v2541_v63 }
0x1c5b   :  { %v2548_v10 = vsel %vm133_vm0, %v2544_v2, 0.0 }
0x1c5c   :  { %v2545_v1 = vsel %vm133_vm0, %v2543_v0, 0.0 }
0x1c5d   :  { %2546 = vadd.xlane.f32.xlu0 %v2545_v1 }
0x1c61   :  { %2549 = vadd.xlane.f32.xlu0 %v2548_v10 }
0x1cea   :  { %v2547_v7 = vpop.xlane.xlu0 %2546 }
0x1ceb   :  { %v2551_v8 = vmul.f32 0.03125, %v2547_v7 }
0x1ced   :  { %v2553_v11 = vadd.f32 1e-12, %v2551_v8 }
0x1cee   :  { %v2550_v47 = vpop.xlane.xlu0 %2549 }
0x1cef   :  { %3837 = vrsqrt.f32 %v2553_v11  ;;  %v2552_v12 = vmul.f32 0.03125, %v2550_v47 }
0x1cf1   :  { %v2554_v13 = vadd.f32 1e-12, %v2552_v12 }
0x1cf3   :  { %3839 = vrsqrt.f32 %v2554_v13 }
0x1cf9   :  { %v3838_v14 = vpop.eup %3837 }
0x1cfa   :  { %v2557_v17 = vmul.f32 %v3838_v14, %v2541_v63  ;;  %v2833_v14 = vld [vmem:[%s4712_s17] sm:$0xff] }
0x1cfc   :  { %v2565_v19 = vmul.f32 %v3099_v15, %v2557_v17 }
0x1cfd   :  { %v3840_v20 = vpop.eup %3839 }
0x1cfe   :  { %v2558_v21 = vmul.f32 %v3840_v20, %v2542_v61  ;;  %v2573_v42 = vadd.f32 %v3100_v18, %v2565_v19  ;;  %v2836_v19 = vld [vmem:[%s4712_s17 + $0x18] sm:$0xff] }
0x1d00   :  { %v2566_v22 = vmul.f32 %v3099_v15, %v2558_v21  ;;  %3449 = vmatprep.mubr.msk.f32.mxu1 %vm133_vm0, %v2573_v42  ;;  %v2834_v15 = vld [vmem:[%s4712_s17 + $0x8] sm:$0xff] }
0x1d01   :  { %v3642_v17 = vpack.c.bf16 %v2834_v15, %v2833_v14 }
0x1d02   :  { %v2574_v23 = vadd.f32 %v3100_v18, %v2566_v22  ;;  %v2835_v18 = vld [vmem:[%s4712_s17 + $0x10] sm:$0xff] }
0x1d03   :  { %3643 = vmatprep.subr.bf16.mxu1 %v3642_v17  ;;  %v3646_v20 = vpack.c.bf16 %v2836_v19, %v2835_v18 }
0x1d04   :  { %3450 = vmatmul.mubr.msk.f32.vlgmr.msra.gmra.mrb[22].mxu1 %vm133_vm0, %v2574_v23 }
0x1d05   :  { %3645 = vmatpush3.bf16.msra.mxu1 %v3642_v17 }
0x1d06   :  { %3647 = vmatprep.subr.bf16.mxu1 %v3646_v20 }
0x1d09   :  { %3649 = vmatpush3.bf16.msra.mxu1 %v3646_v20 }
0x1dd7   :  { %v3451_v37 = vpop.f32.mrb[22].mxu1 }
0x1dd8   :  { %v2666_v38 = vadd.f32 %v3451_v37, %v3105_v36  ;;  %v2660_v39 = vpop.f32.mrb[23].mxu1  ;;  %v3124_v37 = vld [vmem:[%s4713_s18] ss:$0 sm:$0xff] }
0x1dd9   :  { %v2661_v40 = vadd.f32 %v3105_v36, %v2660_v39  ;;  %v4019_v36 = vmov 0  }
0x1dda   :  { %v2670_v44 = vmul.f32 %v2666_v38, %v2666_v38  ;;  %3756 = vset.pattern.permute.xlu1 %v4019_v36  ;;  %3755 = vset.pattern.permute.xlu0 %v4019_v36 }
0x1ddb   :  { %v2669_v45 = vmul.f32 %v2661_v40, %v2661_v40 }
0x1ddc   :  { %v2672_v46 = vmul.f32 %v2670_v44, %v2666_v38 }
0x1ddd   :  { %v2671_v48 = vmul.f32 %v2669_v45, %v2661_v40 }
0x1dde   :  { %v2674_v50 = vmul.f32 0.044715, %v2672_v46 }
0x1ddf   :  { %v2673_v52 = vmul.f32 0.044715, %v2671_v48  ;;  %v2929_v48 = vld [vmem:[%s4745_s23 + $0x8] sm:$0xff] }
0x1de0   :  { %v2676_v53 = vadd.f32 %v2674_v50, %v2666_v38  ;;  %v2928_v50 = vld [vmem:[%s4745_s23] sm:$0xff] }
0x1de1   :  { %v2675_v49 = vadd.f32 %v2673_v52, %v2661_v40 }
0x1de2   :  { %v2678_v51 = vmul.f32 0.7978846, %v2676_v53 }
0x1de3   :  { %v2677_v16 = vmul.f32 0.7978846, %v2675_v49 }
0x1de4   :  { %3841 = vtanh.f32 %v2678_v51 }
0x1de5   :  { %3843 = vtanh.f32 %v2677_v16 }
0x1dee   :  { %v3842_v41 = vpop.eup %3841 }
0x1def   :  { %v3844_v43 = vpop.eup %3843  ;;  %v2682_v54 = vadd.f32 1.0, %v3842_v41 }
0x1df0   :  { %v2681_v55 = vadd.f32 1.0, %v3844_v43  ;;  %v2954_v43 = vlaneseq }
0x1df1   :  { %v2684_v56 = vmul.f32 0.5, %v2682_v54 }
0x1df2   :  { %v2683_v57 = vmul.f32 0.5, %v2681_v55  ;;  %v2955_v54 = vand.u32 127, %v2954_v43 }
0x1df3   :  { %v2686_v59 = vmul.f32 %v2684_v56, %v2666_v38 }
0x1df4   :  { %v2685_v58 = vmul.f32 %v2683_v57, %v2661_v40  ;;  %v4020_v57 = vmov 0.0  }
0x1df6   :  { %3468 = vmatprep.mubr.msk.f32.mxu0 %vm1375_vm7, %v2685_v58 }
0x1df7   :  { %3469 = vmatmul.mubr.msk.f32.vlgmr.msra.gmra.mrb[22].mxu0 %vm1375_vm7, %v2686_v59 }
0x1eca   :  { %v3470_v61 = vpop.f32.mrb[22].mxu0 }
0x1ecb   :  { %v2782_v63 = vadd.f32 %v3470_v61, %v3117_v60  ;;  %v2776_v0 = vpop.f32.mrb[23].mxu0 }
0x1ecc   :  { %v2777_v1 = vadd.f32 %v3117_v60, %v2776_v0 }
0x1ecd   :  { %v2786_v2 = vadd.f32 %v2782_v63, %v2574_v23 }
0x1ece   :  { %v2785_v10 = vadd.f32 %v2777_v1, %v2573_v42 }
0x1ecf   :  { %v2794_v9 = vsel %vm133_vm0, %v2786_v2, 0.0 }
0x1ed0   :  { %2795 = vadd.xlane.f32.xlu1 %v2794_v9  ;;  %v2791_v3 = vsel %vm133_vm0, %v2785_v10, 0.0 }
0x1ed1   :  { %2792 = vadd.xlane.f32.xlu0 %v2791_v3 }
0x1f5d   :  { %v2796_v4 = vpop.xlane.xlu1 %2795 }
0x1f5e   :  { %v2798_v62 = vmul.f32 0.03125, %v2796_v4  ;;  %v2793_v5 = vpop.xlane.xlu0 %2792 }
0x1f5f   :  { %v2797_v6 = vmul.f32 0.03125, %v2793_v5 }
0x1f60   :  { %v2800_v7 = vsub.f32 %v2786_v2, %v2798_v62 }
0x1f61   :  { %v2799_v8 = vsub.f32 %v2785_v10, %v2797_v6 }
0x1f62   :  { %v2802_v11 = vmul.f32 %v2800_v7, %v2800_v7 }
0x1f63   :  { %v2801_v47 = vmul.f32 %v2799_v8, %v2799_v8 }
0x1f64   :  { %v2806_v12 = vsel %vm133_vm0, %v2802_v11, 0.0 }
0x1f65   :  { %2807 = vadd.xlane.f32.xlu1 %v2806_v12  ;;  %v2803_v13 = vsel %vm133_vm0, %v2801_v47, 0.0 }
0x1f66   :  { %2804 = vadd.xlane.f32.xlu0 %v2803_v13 }
0x1ff2   :  { %v2808_v21 = vpop.xlane.xlu1 %2807 }
0x1ff3   :  { %v2810_v42 = vmul.f32 0.03125, %v2808_v21  ;;  %v2805_v22 = vpop.xlane.xlu0 %2804 }
0x1ff4   :  { %v2809_v23 = vmul.f32 0.03125, %v2805_v22 }
0x1ff5   :  { %v2812_v24 = vadd.f32 1e-12, %v2810_v42 }
0x1ff6   :  { %v2811_v25 = vadd.f32 1e-12, %v2809_v23 }
0x1ff7   :  { %3845 = vrsqrt.f32 %v2812_v24 }
0x1ff8   :  { %3847 = vrsqrt.f32 %v2811_v25 }
0x2001   :  { %v3846_v26 = vpop.eup %3845 }
0x2002   :  { %v3848_v28 = vpop.eup %3847  ;;  %v2816_v29 = vmul.f32 %v3846_v26, %v2800_v7 }
0x2003   :  { %v2815_v31 = vmul.f32 %v3848_v28, %v2799_v8 }
0x2004   :  { %v2824_v33 = vmul.f32 %v3122_v27, %v2816_v29 }
0x2005   :  { %v2823_v32 = vmul.f32 %v3122_v27, %v2815_v31 }
0x2006   :  { %v2832_v30 = vadd.f32 %v3123_v35, %v2824_v33 }
0x2007   :  { %v2831_v34 = vadd.f32 %v3123_v35, %v2823_v32 }
0x2009   :  { %3479 = vmatprep.mubr.msk.f32.mxu1 %vm133_vm0, %v2831_v34 }
0x200a   :  { %3480 = vmatmul.mubr.msk.f32.vlgmr.msra.gmra.mrb[24].mxu1 %vm133_vm0, %v2832_v30 }
0x20dd   :  { %v3481_v38 = vpop.f32.mrb[24].mxu1 }
0x20de   :  { %v2922_v39 = vadd.f32 %v3481_v38, %v3124_v37  ;;  %v2916_v40 = vpop.f32.mrb[25].mxu1 }
0x20df   :  { %v2917_v44 = vadd.f32 %v3124_v37, %v2916_v40 }
0x20e0   :  { %2927 = vst.msk [vmem:[%s4714_s19 + $0x8] sm:$0xff] %vm2925_vm8, %v2922_v39  ;;  %v2933_v45 = vsel %vm2925_vm8, %v2922_v39, -inf }
0x20e1   :  { %2926 = vst.msk [vmem:[%s4714_s19] sm:$0xff] %vm2925_vm8, %v2917_v44  ;;  %2934 = vmax.xlane.f32.xlu1 %v2933_v45  ;;  %v2930_v46 = vsel %vm2925_vm8, %v2917_v44, -inf  ;;  %s4021_s19 = smov [#allocation12]  }
0x20e2   :  { %2931 = vmax.xlane.f32.xlu0 %v2930_v46  ;;  %s3004_s4 = sshll.u32 %s4021_s19, 4  ;;  %s3005_s4 = int_to_ptr.vmem [resolvable:$true] %s3004_s4 }
0x20e3   :  { %s3969_s20 = scalar_lea.vmem %s3005_s4, 16  ;;  %s3973_s7 = scalar_lea.vmem %s3005_s4, 32 }
0x20e4   :  { %p3970_p12 = scmp.ne.s32.totalorder %s3005_s4, %s3969_s20  ;;  %p3974_p13 = scmp.lt.s32.totalorder %s3005_s4, %s3005_s4 }
0x20e5   :  { %p3975_p0 = scmp.lt.s32.totalorder %s3973_s7, %s3969_s20 }
0x20e7   :  { %p3976_p1 = por %p3975_p0, %p3974_p13 }
0x20e9   :  { %p3977_p2 = pnand %p3976_p1, %p3970_p12 }
0x20f2   :  { %2960 = vperm.xlu1 %3756, %v2929_v48  }
0x20f8   :  { %2957 = vperm.xlu0 %3755, %v2928_v50  }
0x216e   :  { %v2935_v52 = vpop.xlane.xlu1 %2934 }
0x216f   :  { %v2937_v53 = vsub.f32 %v2922_v39, %v2935_v52  ;;  %v2932_v49 = vpop.xlane.xlu0 %2931 }
0x2170   :  { %v2936_v51 = vsub.f32 %v2917_v44, %v2932_v49 }
0x2171   :  { %v2940_v16 = vmul.f32 1.442695, %v2937_v53 }
0x2172   :  { %v2938_v41 = vmul.f32 1.442695, %v2936_v51  ;;  %v2961_v56 = vpop.permute.xlu1 %2960 }
0x2173   :  { %3849 = vpow2.f32 %v2940_v16  ;;  %vm2963_vm10 = vcmp.eq.s32.totalorder %v2961_v56, %v2955_v54 }
0x2174   :  { %3851 = vpow2.f32 %v2938_v41  ;;  %v3128_v1 = vsel %vm2963_vm10, 1.0, %v4020_v57 }
0x2175   :  { %v2969_v2 = vmul.f32 %v3128_v1, %v2922_v39 }
0x2177   :  { %v2958_v55 = vpop.permute.xlu0 %2957  ;;  %v2973_v9 = vsel %vm2925_vm8, %v2969_v2, 0.0 }
0x2178   :  { %vm2962_vm9 = vcmp.eq.s32.totalorder %v2958_v55, %v2955_v54 }
0x2179   :  { %v3127_v58 = vsel %vm2962_vm9, 1.0, %v4020_v57 }
0x217a   :  { %v2968_v63 = vmul.f32 %v3127_v58, %v2917_v44 }
0x217c   :  { %v2970_v10 = vsel %vm2925_vm8, %v2968_v63, 0.0 }
0x217d   :  { %v3850_v59 = vpop.eup %3849 }
0x217e   :  { %v3852_v60 = vpop.eup %3851  ;;  %v2945_v61 = vsel %vm2925_vm8, %v3850_v59, 0.0 }
0x217f   :  { %2946 = vadd.xlane.f32.xlu0 %v2945_v61  ;;  %v2942_v0 = vsel %vm2925_vm8, %v3852_v60, 0.0 }
0x2180   :  { %2943 = vadd.xlane.f32.xlu1 %v2942_v0 }
0x2184   :  { %2971 = vadd.xlane.f32.xlu1 %v2970_v10 }
0x2188   :  { %2974 = vadd.xlane.f32.xlu1 %v2973_v9 }
0x220c   :  { %v2947_v3 = vpop.xlane.xlu0 %2946 }
0x220d   :  { %3853 = vlog2.f32 %v2947_v3  ;;  %v2944_v4 = vpop.xlane.xlu1 %2943 }
0x220e   :  { %3855 = vlog2.f32 %v2944_v4 }
0x2211   :  { %v2972_v62 = vpop.xlane.xlu1 %2971 }
0x2215   :  { %v2975_v12 = vpop.xlane.xlu1 %2974 }
0x2217   :  { %v3854_v5 = vpop.eup %3853 }
0x2218   :  { %v3856_v6 = vpop.eup %3855  ;;  %v2951_v7 = vmul.f32 0.6931472, %v3854_v5 }
0x2219   :  { %v2949_v8 = vmul.f32 0.6931472, %v3856_v6 }
0x221a   :  { %v2953_v11 = vadd.f32 %v2951_v7, %v2935_v52 }
0x221b   :  { %v2952_v47 = vadd.f32 %v2949_v8, %v2932_v49 }
0x221c   :  { %v2977_v13 = vsub.f32 %v2953_v11, %v2975_v12 }
0x221d   :  { %v2976_v14 = vsub.f32 %v2952_v47, %v2972_v62 }
0x221e   :  { %v2980_v15 = vsel %vm2978_vm11, %v2977_v13, 0.0 }
0x221f   :  { %v2979_v17 = vsel %vm2978_vm11, %v2976_v14, 0.0 }
0x2220   :  { %v2981_v18 = vadd.f32 %v2980_v15, %v2979_v17 }
0x2222   :  { %2982 = vadd.xlane.f32.xlu1 %v2981_v18 }
0x22af   :  { %v2983_v19 = vpop.xlane.xlu1 %2982 }
0x22b0   :  { %v2984_v20 = vrot.slane %v2983_v19, 4 }
0x22b2   :  { %v2985_v21 = vadd.f32 %v2984_v20, %v2983_v19 }
0x22b4   :  { %v2986_v42 = vrot.slane %v2985_v21, 2 }
0x22b6   :  { %v2987_v22 = vadd.f32 %v2986_v42, %v2985_v21 }
0x22b8   :  { %v2988_v23 = vrot.slane %v2987_v22, 1 }
0x22ba   :  { %v2989_v24 = vadd.f32 %v2988_v23, %v2987_v22 }
0x22bc   :  { %3650 = vpush %v2989_v24 }
0x22ed   :  { %s3651_s28 = spop %3650 }
0x22ee   :  { %v2991_v25 = vstv %s3651_s28 }
0x22ef   :  { %v2993_v26 = vmul.f32 0.0625, %v2991_v25 }
0x22f1   :  { %2995 = vst.msk [vmem:[#allocation12] sm:$0x1] %vm2994_vm12, %v2993_v26 }
0x22f2   :  { %3980 = shalt.err (!%p3977_p2)
}
0x22f3   :  { %s4746_s8 = sld [smem:[#allocation22_spill]] }
0x22f9   :  { %s3981_s14 = scalar_lea.hbm %s4746_s8, 16 }
0x22fa   :  { %p3982_p3 = scmp.ne.s32.totalorder %s4746_s8, %s3981_s14  ;;  %p3985_p4 = scmp.lt.u32.totalorder %s3981_s14, %s4746_s8 }
0x22fc   :  { %p3987_p5 = pnand %p3985_p4, %p3982_p3 }
0x22fe   :  { %3990 = shalt.err (!%p3987_p5)
}
0x22ff   :  { %3007 = dma.vmem_to_hbm [thread:$0]  %s3005_s4, 16, %s4746_s8, [#allocation5]  }
0x2300   :  { %3997 = dma.done.wait [#allocation5], 16  }
0x2301   :  { %3998 = vsyncadd [#allocation5], 4294967280 }
0x2302   :  { %3013 = vsyncpa [#allocation4], 1 }
0x2303   :  { %3014 = vsyncpa [#allocation7], 1 }
0x2304   :  { %3015 = vsyncpa [#allocation10], 1 }
0x2305   :  { %3016 = vsyncpa [#allocation5], 1 }

</bundles_post_ra>
